<compile_context>
chip_gen: v6e
topology: v6e:2x2x1
jax: 0.10.0
libtpu: 0.0.40
codegen_flags: <defaults>
</compile_context>

<pallas_src>
import math
from functools import partial

import jax
import jax.numpy as jnp
import numpy as np
from jax.experimental import pallas as pl
from jax.experimental.pallas import tpu as pltpu


# ----------------------------- helpers ---------------------------------------

def _silu(x):
    return x * jax.nn.sigmoid(x)


def _layernorm(x, gamma, beta, eps=1e-6):
    # PyTorch nn.LayerNorm(eps=1e-6): biased variance over last dim, f32 stats.
    mean = jnp.mean(x, axis=-1, keepdims=True)
    var = jnp.mean((x - mean) ** 2, axis=-1, keepdims=True)
    return (x - mean) * jax.lax.rsqrt(var + eps) * gamma + beta


def _vmem_limit_bytes():
    """Scoped VMEM budget with headroom: ~96 MiB on v5e/v6e, ~48 MiB on v7x."""
    cap = 64 << 20
    try:
        info = pltpu.get_tpu_info()
        cap = int(getattr(info, "vmem_capacity_bytes", cap) or cap)
    except Exception:
        pass
    return int(min(cap * 3 // 4, 100 << 20))


# ----------------------------- Pallas kernel ----------------------------------

def token_refiner_block_kernel(
    x_ref,        # (L, hid)    tokens for this batch element (f32)
    gates_ref,    # (1, 2*hid)  precomputed adaLN gates (f32)
    mrow_ref,     # (1, L)      token mask row    (f32 0/1)
    mcol_ref,     # (L, 1)      token mask column (f32 0/1)
    n1g_ref, n1b_ref,          # norm1 gamma/beta   (1, hid)          f32
    wqkv_ref, bqkv_ref,        # qkv   (hid, 3*hid) bf16, (1, 3*hid)  f32
    wproj_ref, bproj_ref,      # proj  (hid, hid)   bf16, (1, hid)    f32
    n2g_ref, n2b_ref,          # norm2 gamma/beta   (1, hid)          f32
    w1_ref, b1_ref,            # mlp fc1 (hid, mlp) bf16, (1, mlp)    f32
    w2_ref, b2_ref,            # mlp fc2 (mlp, hid) bf16, (1, hid)    f32
    o_ref,        # (L, hid) output
    q_scr, k_scr, v_scr,       # (H, L, D) bf16 VMEM scratch
    attn_scr,                  # (H, L, D) bf16 VMEM scratch (per-head outputs)
    attn_flat,                 # (L, hid)  bf16 VMEM scratch (concat heads)
    *, num_heads, head_dim,
):
    L = x_ref.shape[0]
    hid = num_heads * head_dim

    x = x_ref[...]                              # residual stream, already f32
    gates = gates_ref[...]                      # (1, 2*hid) f32
    gate_msa = gates[:, :hid]                   # broadcasts over L
    gate_mlp = gates[:, hid:]

    # Boolean attention mask: allowed[i, j] = mask[i] & mask[j], column 0
    # always attendable.  Kept boolean; no dense f32 bias is materialized.
    mrow = mrow_ref[...]                        # (1, L)
    mcol = mcol_ref[...]                        # (L, 1)
    col0 = jax.lax.broadcasted_iota(jnp.int32, (L, L), 1) == 0
    allowed = (mcol * mrow > 0.5) | col0        # (L, L) bool

    # norm1 + fused QKV projection (bf16 MXU operands, f32 accumulation).
    nx = _layernorm(x, n1g_ref[...], n1b_ref[...]).astype(jnp.bfloat16)
    qkv = jnp.dot(nx, wqkv_ref[...],
                  preferred_element_type=jnp.float32) + bqkv_ref[...]

    # Stage per-head Q (pre-scaled by 1/sqrt(D)), K, V into (H, L, D) VMEM
    # scratches.  Static lane-aligned slices here; dynamic indexing later is
    # only on the leading axis (always supported / cheap).
    scale = 1.0 / math.sqrt(head_dim)
    for h in range(num_heads):                  # static: just slice+cast+store
        q_scr[h] = (qkv[:, h * head_dim:(h + 1) * head_dim]
                    * scale).astype(jnp.bfloat16)
        k_scr[h] = qkv[:, hid + h * head_dim:
                       hid + (h + 1) * head_dim].astype(jnp.bfloat16)
        v_scr[h] = qkv[:, 2 * hid + h * head_dim:
                       2 * hid + (h + 1) * head_dim].astype(jnp.bfloat16)

    # Per-head attention with bounded live ranges (one head's (L,L) score /
    # softmax working set at a time).  qk_norm=False -> Identity.
    def head_body(h, carry):
        qh = q_scr[h]                           # (L, D) bf16
        kh = k_scr[h]
        vh = v_scr[h]
        s = jax.lax.dot_general(qh, kh, (((1,), (1,)), ((), ())),
                                preferred_element_type=jnp.float32)
        s = jnp.where(allowed, s, -1e9)
        s = s - jnp.max(s, axis=-1, keepdims=True)
        p = jnp.exp(s)                          # unnormalized probs, f32
        denom = jnp.sum(p, axis=-1, keepdims=True)
        o_h = jnp.dot(p.astype(jnp.bfloat16), vh,
                      preferred_element_type=jnp.float32)
        # Normalize AFTER the PV matmul: L*D muls instead of L*L.
        o_h = o_h * pl.reciprocal(denom, approx=True)
        attn_scr[h] = o_h.astype(jnp.bfloat16)
        return carry

    jax.lax.fori_loop(0, num_heads, head_body, 0)

    # Concatenate heads with static, lane-aligned stores.
    for h in range(num_heads):
        attn_flat[:, h * head_dim:(h + 1) * head_dim] = attn_scr[h]

    # Output projection + gated residual (residual math in f32).
    proj = jnp.dot(attn_flat[...], wproj_ref[...],
                   preferred_element_type=jnp.float32) + bproj_ref[...]
    x = x + gate_msa * proj

    # norm2 + MLP (Linear -> SiLU -> Linear) + gated residual.
    nx2 = _layernorm(x, n2g_ref[...], n2b_ref[...]).astype(jnp.bfloat16)
    h1 = _silu(jnp.dot(nx2, w1_ref[...],
                       preferred_element_type=jnp.float32) + b1_ref[...])
    mlp_out = jnp.dot(h1.astype(jnp.bfloat16), w2_ref[...],
                      preferred_element_type=jnp.float32) + b2_ref[...]
    x = x + gate_mlp * mlp_out

    o_ref[...] = x.astype(o_ref.dtype)


# ------------------------------ JAX wrapper ----------------------------------

_KERNEL_PARAMS = ("n1g", "n1b", "wqkv", "bqkv", "wproj", "bproj",
                  "n2g", "n2b", "w1", "b1", "w2", "b2")


def run_refiner_block(x, gates, mask_row, mask_col, params, num_heads):
    B, L, hid = x.shape
    head_dim = hid // num_heads
    weights = [params[name] for name in _KERNEL_PARAMS]

    def weight_spec(a):
        n = a.ndim
        # Constant index_map over the B grid -> single-buffer the block
        # (no double-buffer waste for weights that never change).
        # TODO(synk): replace with streamed weight slabs over an N/K grid axis
        # for production sizes (hid=3072) so a block fits v7x's 64 MiB VMEM,
        # with the batch axis innermost so the slab is reused across B.
        return pl.BlockSpec(a.shape, lambda b, n=n: (0,) * n,
                            pipeline_mode=pl.Buffered(1))

    in_specs = [
        pl.BlockSpec((None, L, hid), lambda b: (b, 0, 0)),        # x
        pl.BlockSpec((None, 1, 2 * hid), lambda b: (b, 0, 0)),    # adaLN gates
        pl.BlockSpec((None, 1, L), lambda b: (b, 0, 0)),          # mask row
        pl.BlockSpec((None, L, 1), lambda b: (b, 0, 0)),          # mask col
    ] + [weight_spec(w) for w in weights]

    out_spec = pl.BlockSpec((None, L, hid), lambda b: (b, 0, 0))

    kernel = partial(token_refiner_block_kernel,
                     num_heads=num_heads, head_dim=head_dim)
    return pl.pallas_call(
        kernel,
        out_shape=jax.ShapeDtypeStruct((B, L, hid), x.dtype),
        grid_spec=pltpu.PrefetchScalarGridSpec(
            num_scalar_prefetch=0,
            grid=(B,),
            in_specs=in_specs,
            out_specs=out_spec,
            scratch_shapes=[
                pltpu.VMEM((num_heads, L, head_dim), jnp.bfloat16),  # q
                pltpu.VMEM((num_heads, L, head_dim), jnp.bfloat16),  # k
                pltpu.VMEM((num_heads, L, head_dim), jnp.bfloat16),  # v
                pltpu.VMEM((num_heads, L, head_dim), jnp.bfloat16),  # attn/head
                pltpu.VMEM((L, hid), jnp.bfloat16),                  # attn flat
            ],
        ),
        # x is fully overwritten by the residual-updated value: donate it.
        input_output_aliases={0: 0},
        # TODO(synk): add a second "parallel" axis (query-token tiles) so both
        # v7x TensorCores have work when B == 1.
        compiler_params=pltpu.CompilerParams(
            dimension_semantics=("parallel",),
            vmem_limit_bytes=_vmem_limit_bytes(),
        ),
    )(x, gates, mask_row, mask_col, *weights)


def individual_token_refiner(x, c, mask, block_params, num_heads):
    """Mirrors IndividualTokenRefiner.forward."""
    B, L, hid = x.shape
    if mask is not None:
        m = mask.astype(jnp.float32)
    else:
        m = jnp.ones((B, L), jnp.float32)
    mask_row = m.reshape(B, 1, L)       # O(L) bytes per batch, not O(L^2)
    mask_col = m.reshape(B, L, 1)
    c = c.astype(jnp.float32)
    for p in block_params:
        # adaLN path hoisted to XLA: tiny (B,hid)x(hid,2*hid) matmul, so the
        # adaLN weight never occupies kernel VMEM.
        gates = (jax.nn.silu(c) @ p["wada"] + p["bada"][0]).reshape(B, 1, 2 * hid)
        x = run_refiner_block(x, gates, mask_row, mask_col, p, num_heads)
    return x


individual_token_refiner_jit = jax.jit(individual_token_refiner,
                                       static_argnames=("num_heads",))


# --------------------------- pure-JAX reference -------------------------------

def _ref_layernorm(x, g, b, eps=1e-6):
    mean = jnp.mean(x, axis=-1, keepdims=True)
    var = jnp.mean((x - mean) ** 2, axis=-1, keepdims=True)
    return (x - mean) / jnp.sqrt(var + eps) * g + b


def reference_block(x, c, attn_bias, p, num_heads):
    B, L, hid = x.shape
    D = hid // num_heads
    f32 = lambda a: a.astype(jnp.float32)
    gates = jax.nn.silu(c) @ p["wada"] + p["bada"][0]
    gate_msa, gate_mlp = gates[:, :hid], gates[:, hid:]
    nx = _ref_layernorm(x, p["n1g"][0], p["n1b"][0])
    qkv = nx @ f32(p["wqkv"]) + p["bqkv"][0]
    q, k, v = jnp.split(qkv, 3, axis=-1)
    q = q.reshape(B, L, num_heads, D)
    k = k.reshape(B, L, num_heads, D)
    v = v.reshape(B, L, num_heads, D)
    s = jnp.einsum("blhd,bmhd->bhlm", q, k) / math.sqrt(D) + attn_bias[:, None]
    pw = jax.nn.softmax(s, axis=-1)
    attn = jnp.einsum("bhlm,bmhd->blhd", pw, v).reshape(B, L, hid)
    x = x + gate_msa[:, None, :] * (attn @ f32(p["wproj"]) + p["bproj"][0])
    nx2 = _ref_layernorm(x, p["n2g"][0], p["n2b"][0])
    mlp = jax.nn.silu(nx2 @ f32(p["w1"]) + p["b1"][0]) @ f32(p["w2"]) + p["b2"][0]
    return x + gate_mlp[:, None, :] * mlp


def reference_refiner(x, c, mask, block_params, num_heads):
    B, L, _ = x.shape
    m = mask.astype(bool)
    allowed = m[:, :, None] & m[:, None, :]
    allowed = allowed.at[:, :, 0].set(True)
    attn_bias = jnp.where(allowed, 0.0, -1e9).astype(jnp.float32)
    for p in block_params:
        x = reference_block(x, c, attn_bias, p, num_heads)
    return x


# ------------------------------ param init ------------------------------------

def init_block_params(key, hidden, mlp_hidden):
    # Deterministic synthetic init.  NOTE: the PyTorch module zero-inits the
    # adaLN Linear (making every block a no-op); we use small random values so
    # the full datapath is exercised.  Matmul weights stored PRE-TRANSPOSED as
    # (in_features, out_features) in bf16; norms / biases stay f32.
    ks = jax.random.split(key, 10)
    rnd = lambda k, shape: (0.02 * jax.random.normal(k, shape)).astype(jnp.float32)
    bf = lambda a: a.astype(jnp.bfloat16)
    return {
        "n1g": jnp.ones((1, hidden), jnp.float32) + rnd(ks[0], (1, hidden)),
        "n1b": rnd(ks[1], (1, hidden)),
        "wqkv": bf(rnd(ks[2], (hidden, 3 * hidden))),
        "bqkv": rnd(ks[3], (1, 3 * hidden)),
        "wproj": bf(rnd(ks[4], (hidden, hidden))),
        "bproj": rnd(ks[5], (1, hidden)),
        "n2g": jnp.ones((1, hidden), jnp.float32) + rnd(ks[6], (1, hidden)),
        "n2b": rnd(ks[7], (1, hidden)),
        "w1": bf(rnd(ks[8], (hidden, mlp_hidden))),
        "b1": jnp.zeros((1, mlp_hidden), jnp.float32),
        "w2": bf(rnd(ks[9], (mlp_hidden, hidden))),
        "b2": jnp.zeros((1, hidden), jnp.float32),
        # adaLN weight stays outside the kernel (hoisted to XLA); keep f32.
        "wada": rnd(jax.random.fold_in(key, 100), (hidden, 2 * hidden)),
        "bada": rnd(jax.random.fold_in(key, 101), (1, 2 * hidden)),
    }


# --------------------------------- main ---------------------------------------

if __name__ == "__main__":
    B, L, hidden = 2, 8, 64
    num_heads, depth = 4, 2
    mlp_hidden = int(hidden * 4.0)

    root = jax.random.PRNGKey(0)
    kx, kc, *kblocks = jax.random.split(root, 2 + depth)

    x = jax.random.normal(kx, (B, L, hidden), jnp.float32)
    c = jax.random.normal(kc, (B, hidden), jnp.float32)
    # boolean token mask (B, L): batch 0 fully valid, batch 1 has padding
    mask = jnp.array([[1] * L, [1] * 5 + [0] * (L - 5)], dtype=jnp.int32)

    block_params = [init_block_params(kblocks[d], hidden, mlp_hidden)
                    for d in range(depth)]

    out = individual_token_refiner_jit(x, c, mask, block_params,
                                       num_heads=num_heads)
    out = jax.block_until_ready(out)

    ref = reference_refiner(x, c, mask, block_params, num_heads)
    np.testing.assert_allclose(np.asarray(out), np.asarray(ref),
                               rtol=1e-2, atol=1e-2)
    print("KERNEL_OK")
</pallas_src>

<mosaic_0001>
module attributes {stable_mosaic.version = 11 : i64} {
  func.func @token_refiner_block_kernel(%arg0: i32, %arg1: memref<1x8x64xf32, #tpu.memory_space<vmem>>, %arg2: memref<1x1x128xf32, #tpu.memory_space<vmem>>, %arg3: memref<1x1x8xf32, #tpu.memory_space<vmem>>, %arg4: memref<1x8x1xf32, #tpu.memory_space<vmem>>, %arg5: memref<1x64xf32, #tpu.memory_space<vmem>>, %arg6: memref<1x64xf32, #tpu.memory_space<vmem>>, %arg7: memref<64x192xbf16, #tpu.memory_space<vmem>>, %arg8: memref<1x192xf32, #tpu.memory_space<vmem>>, %arg9: memref<64x64xbf16, #tpu.memory_space<vmem>>, %arg10: memref<1x64xf32, #tpu.memory_space<vmem>>, %arg11: memref<1x64xf32, #tpu.memory_space<vmem>>, %arg12: memref<1x64xf32, #tpu.memory_space<vmem>>, %arg13: memref<64x256xbf16, #tpu.memory_space<vmem>>, %arg14: memref<1x256xf32, #tpu.memory_space<vmem>>, %arg15: memref<256x64xbf16, #tpu.memory_space<vmem>>, %arg16: memref<1x64xf32, #tpu.memory_space<vmem>>, %arg17: memref<1x8x64xf32, #tpu.memory_space<vmem>>, %arg18: memref<4x8x16xbf16, #tpu.memory_space<vmem>>, %arg19: memref<4x8x16xbf16, #tpu.memory_space<vmem>>, %arg20: memref<4x8x16xbf16, #tpu.memory_space<vmem>>, %arg21: memref<4x8x16xbf16, #tpu.memory_space<vmem>>, %arg22: memref<8x64xbf16, #tpu.memory_space<vmem>>) attributes {dimension_semantics = [#tpu.dimension_semantics<parallel>], iteration_bounds = array<i64: 2>, scalar_prefetch = 0 : i64, scratch_operands = 5 : i64, tpu.core_type = #tpu.core_type<tc>, window_params = [{transform_indices = @transform_0, window_bounds = array<i64: 1, 8, 64>}, {transform_indices = @transform_1, window_bounds = array<i64: 1, 1, 128>}, {transform_indices = @transform_2, window_bounds = array<i64: 1, 1, 8>}, {transform_indices = @transform_3, window_bounds = array<i64: 1, 8, 1>}, {pipeline_mode = #tpu.pipeline_mode<synchronous>, transform_indices = @transform_4, window_bounds = array<i64: 1, 64>}, {pipeline_mode = #tpu.pipeline_mode<synchronous>, transform_indices = @transform_5, window_bounds = array<i64: 1, 64>}, {pipeline_mode = #tpu.pipeline_mode<synchronous>, transform_indices = @transform_6, window_bounds = array<i64: 64, 192>}, {pipeline_mode = #tpu.pipeline_mode<synchronous>, transform_indices = @transform_7, window_bounds = array<i64: 1, 192>}, {pipeline_mode = #tpu.pipeline_mode<synchronous>, transform_indices = @transform_8, window_bounds = array<i64: 64, 64>}, {pipeline_mode = #tpu.pipeline_mode<synchronous>, transform_indices = @transform_9, window_bounds = array<i64: 1, 64>}, {pipeline_mode = #tpu.pipeline_mode<synchronous>, transform_indices = @transform_10, window_bounds = array<i64: 1, 64>}, {pipeline_mode = #tpu.pipeline_mode<synchronous>, transform_indices = @transform_11, window_bounds = array<i64: 1, 64>}, {pipeline_mode = #tpu.pipeline_mode<synchronous>, transform_indices = @transform_12, window_bounds = array<i64: 64, 256>}, {pipeline_mode = #tpu.pipeline_mode<synchronous>, transform_indices = @transform_13, window_bounds = array<i64: 1, 256>}, {pipeline_mode = #tpu.pipeline_mode<synchronous>, transform_indices = @transform_14, window_bounds = array<i64: 256, 64>}, {pipeline_mode = #tpu.pipeline_mode<synchronous>, transform_indices = @transform_15, window_bounds = array<i64: 1, 64>}, {transform_indices = @transform_16, window_bounds = array<i64: 1, 8, 64>}]} {
    %c0 = arith.constant 0 : index
    %c0_0 = arith.constant 0 : index
    %c0_1 = arith.constant 0 : index
    %0 = vector.load %arg1[%c0, %c0_0, %c0_1] : memref<1x8x64xf32, #tpu.memory_space<vmem>>, vector<1x8x64xf32>
    %1 = vector.shape_cast %0 : vector<1x8x64xf32> to vector<8x64xf32>
    %c0_2 = arith.constant 0 : index
    %c0_3 = arith.constant 0 : index
    %c0_4 = arith.constant 0 : index
    %2 = vector.load %arg2[%c0_2, %c0_3, %c0_4] : memref<1x1x128xf32, #tpu.memory_space<vmem>>, vector<1x1x128xf32>
    %3 = vector.shape_cast %2 : vector<1x1x128xf32> to vector<1x128xf32>
    %4 = vector.extract_strided_slice %3 {offsets = [0, 0], sizes = [1, 64], strides = [1, 1]} : vector<1x128xf32> to vector<1x64xf32>
    %5 = vector.extract_strided_slice %3 {offsets = [0, 64], sizes = [1, 64], strides = [1, 1]} : vector<1x128xf32> to vector<1x64xf32>
    %c0_5 = arith.constant 0 : index
    %c0_6 = arith.constant 0 : index
    %c0_7 = arith.constant 0 : index
    %6 = vector.load %arg3[%c0_5, %c0_6, %c0_7] : memref<1x1x8xf32, #tpu.memory_space<vmem>>, vector<1x1x8xf32>
    %7 = vector.shape_cast %6 : vector<1x1x8xf32> to vector<1x8xf32>
    %c0_8 = arith.constant 0 : index
    %c0_9 = arith.constant 0 : index
    %c0_10 = arith.constant 0 : index
    %8 = vector.load %arg4[%c0_8, %c0_9, %c0_10] : memref<1x8x1xf32, #tpu.memory_space<vmem>>, vector<1x8x1xf32>
    %9 = vector.shape_cast %8 : vector<1x8x1xf32> to vector<8x1xf32>
    %10 = tpu.iota {dimensions = array<i32: 1>} : vector<8x8xi32>
    %c0_i32 = arith.constant 0 : i32
    %11 = vector.broadcast %c0_i32 : i32 to vector<8x8xi32>
    %12 = arith.cmpi eq, %10, %11 : vector<8x8xi32>
    %13 = vector.broadcast %9 : vector<8x1xf32> to vector<8x8xf32>
    %14 = vector.broadcast %7 : vector<1x8xf32> to vector<8x8xf32>
    %15 = arith.mulf %13, %14 : vector<8x8xf32>
    %cst = arith.constant 5.000000e-01 : f32
    %16 = vector.broadcast %cst : f32 to vector<8x8xf32>
    %17 = arith.cmpf ogt, %15, %16 : vector<8x8xf32>
    %18 = arith.ori %17, %12 : vector<8x8xi1>
    %c0_11 = arith.constant 0 : index
    %c0_12 = arith.constant 0 : index
    %19 = vector.load %arg5[%c0_11, %c0_12] : memref<1x64xf32, #tpu.memory_space<vmem>>, vector<1x64xf32>
    %c0_13 = arith.constant 0 : index
    %c0_14 = arith.constant 0 : index
    %20 = vector.load %arg6[%c0_13, %c0_14] : memref<1x64xf32, #tpu.memory_space<vmem>>, vector<1x64xf32>
    %cst_15 = arith.constant dense<0.000000e+00> : vector<8xf32>
    %21 = vector.multi_reduction <add>, %1, %cst_15 [1] : vector<8x64xf32> to vector<8xf32>
    %22 = vector.shape_cast %21 : vector<8xf32> to vector<8x1xf32>
    %cst_16 = arith.constant 6.400000e+01 : f32
    %23 = vector.broadcast %cst_16 : f32 to vector<8x1xf32>
    %24 = arith.divf %22, %23 : vector<8x1xf32>
    %25 = vector.broadcast %24 : vector<8x1xf32> to vector<8x64xf32>
    %26 = arith.subf %1, %25 : vector<8x64xf32>
    %27 = arith.mulf %26, %26 : vector<8x64xf32>
    %cst_17 = arith.constant dense<0.000000e+00> : vector<8xf32>
    %28 = vector.multi_reduction <add>, %27, %cst_17 [1] : vector<8x64xf32> to vector<8xf32>
    %29 = vector.shape_cast %28 : vector<8xf32> to vector<8x1xf32>
    %cst_18 = arith.constant 6.400000e+01 : f32
    %30 = vector.broadcast %cst_18 : f32 to vector<8x1xf32>
    %31 = arith.divf %29, %30 : vector<8x1xf32>
    %32 = vector.broadcast %24 : vector<8x1xf32> to vector<8x64xf32>
    %33 = arith.subf %1, %32 : vector<8x64xf32>
    %cst_19 = arith.constant 9.99999997E-7 : f32
    %34 = vector.broadcast %cst_19 : f32 to vector<8x1xf32>
    %35 = arith.addf %31, %34 : vector<8x1xf32>
    %36 = math.rsqrt %35 : vector<8x1xf32>
    %37 = vector.broadcast %36 : vector<8x1xf32> to vector<8x64xf32>
    %38 = arith.mulf %33, %37 : vector<8x64xf32>
    %39 = vector.broadcast %19 : vector<1x64xf32> to vector<8x64xf32>
    %40 = arith.mulf %38, %39 : vector<8x64xf32>
    %41 = vector.broadcast %20 : vector<1x64xf32> to vector<8x64xf32>
    %42 = arith.addf %40, %41 : vector<8x64xf32>
    %43 = arith.truncf %42 : vector<8x64xf32> to vector<8x64xbf16>
    %c0_20 = arith.constant 0 : index
    %c0_21 = arith.constant 0 : index
    %44 = vector.load %arg7[%c0_20, %c0_21] : memref<64x192xbf16, #tpu.memory_space<vmem>>, vector<64x192xbf16>
    %cst_22 = arith.constant dense<0.000000e+00> : vector<8x192xf32>
    %45 = tpu.matmul %43, %44, %cst_22 {dimension_numbers = #tpu.dot_dimension_numbers<[1], [0], [0], [1], [0, 0, 1, 1], [], []>} : vector<8x64xbf16>, vector<64x192xbf16>, vector<8x192xf32> -> vector<8x192xf32>
    %c0_23 = arith.constant 0 : index
    %c0_24 = arith.constant 0 : index
    %46 = vector.load %arg8[%c0_23, %c0_24] : memref<1x192xf32, #tpu.memory_space<vmem>>, vector<1x192xf32>
    %47 = vector.broadcast %46 : vector<1x192xf32> to vector<8x192xf32>
    %48 = arith.addf %45, %47 : vector<8x192xf32>
    %49 = vector.extract_strided_slice %48 {offsets = [0, 0], sizes = [8, 16], strides = [1, 1]} : vector<8x192xf32> to vector<8x16xf32>
    %cst_25 = arith.constant 2.500000e-01 : f32
    %50 = vector.broadcast %cst_25 : f32 to vector<8x16xf32>
    %51 = arith.mulf %49, %50 : vector<8x16xf32>
    %52 = arith.truncf %51 : vector<8x16xf32> to vector<8x16xbf16>
    %c0_26 = arith.constant 0 : index
    %c0_27 = arith.constant 0 : index
    %c0_28 = arith.constant 0 : index
    %53 = vector.load %arg18[%c0_26, %c0_27, %c0_28] : memref<4x8x16xbf16, #tpu.memory_space<vmem>>, vector<1x8x16xbf16>
    %54 = vector.shape_cast %53 : vector<1x8x16xbf16> to vector<8x16xbf16>
    %55 = vector.shape_cast %52 : vector<8x16xbf16> to vector<1x8x16xbf16>
    tpu.vector_store %arg18[%c0_26, %c0_27, %c0_28], %55 {strides = array<i32>} : memref<4x8x16xbf16, #tpu.memory_space<vmem>>, vector<1x8x16xbf16>,
    %56 = vector.extract_strided_slice %48 {offsets = [0, 64], sizes = [8, 16], strides = [1, 1]} : vector<8x192xf32> to vector<8x16xf32>
    %57 = arith.truncf %56 : vector<8x16xf32> to vector<8x16xbf16>
    %c0_29 = arith.constant 0 : index
    %c0_30 = arith.constant 0 : index
    %c0_31 = arith.constant 0 : index
    %58 = vector.load %arg19[%c0_29, %c0_30, %c0_31] : memref<4x8x16xbf16, #tpu.memory_space<vmem>>, vector<1x8x16xbf16>
    %59 = vector.shape_cast %58 : vector<1x8x16xbf16> to vector<8x16xbf16>
    %60 = vector.shape_cast %57 : vector<8x16xbf16> to vector<1x8x16xbf16>
    tpu.vector_store %arg19[%c0_29, %c0_30, %c0_31], %60 {strides = array<i32>} : memref<4x8x16xbf16, #tpu.memory_space<vmem>>, vector<1x8x16xbf16>,
    %61 = vector.extract_strided_slice %48 {offsets = [0, 128], sizes = [8, 16], strides = [1, 1]} : vector<8x192xf32> to vector<8x16xf32>
    %62 = arith.truncf %61 : vector<8x16xf32> to vector<8x16xbf16>
    %c0_32 = arith.constant 0 : index
    %c0_33 = arith.constant 0 : index
    %c0_34 = arith.constant 0 : index
    %63 = vector.load %arg20[%c0_32, %c0_33, %c0_34] : memref<4x8x16xbf16, #tpu.memory_space<vmem>>, vector<1x8x16xbf16>
    %64 = vector.shape_cast %63 : vector<1x8x16xbf16> to vector<8x16xbf16>
    %65 = vector.shape_cast %62 : vector<8x16xbf16> to vector<1x8x16xbf16>
    tpu.vector_store %arg20[%c0_32, %c0_33, %c0_34], %65 {strides = array<i32>} : memref<4x8x16xbf16, #tpu.memory_space<vmem>>, vector<1x8x16xbf16>,
    %66 = vector.extract_strided_slice %48 {offsets = [0, 16], sizes = [8, 16], strides = [1, 1]} : vector<8x192xf32> to vector<8x16xf32>
    %cst_35 = arith.constant 2.500000e-01 : f32
    %67 = vector.broadcast %cst_35 : f32 to vector<8x16xf32>
    %68 = arith.mulf %66, %67 : vector<8x16xf32>
    %69 = arith.truncf %68 : vector<8x16xf32> to vector<8x16xbf16>
    %c1 = arith.constant 1 : index
    %c0_36 = arith.constant 0 : index
    %c0_37 = arith.constant 0 : index
    %70 = vector.load %arg18[%c1, %c0_36, %c0_37] : memref<4x8x16xbf16, #tpu.memory_space<vmem>>, vector<1x8x16xbf16>
    %71 = vector.shape_cast %70 : vector<1x8x16xbf16> to vector<8x16xbf16>
    %72 = vector.shape_cast %69 : vector<8x16xbf16> to vector<1x8x16xbf16>
    tpu.vector_store %arg18[%c1, %c0_36, %c0_37], %72 {strides = array<i32>} : memref<4x8x16xbf16, #tpu.memory_space<vmem>>, vector<1x8x16xbf16>,
    %73 = vector.extract_strided_slice %48 {offsets = [0, 80], sizes = [8, 16], strides = [1, 1]} : vector<8x192xf32> to vector<8x16xf32>
    %74 = arith.truncf %73 : vector<8x16xf32> to vector<8x16xbf16>
    %c1_38 = arith.constant 1 : index
    %c0_39 = arith.constant 0 : index
    %c0_40 = arith.constant 0 : index
    %75 = vector.load %arg19[%c1_38, %c0_39, %c0_40] : memref<4x8x16xbf16, #tpu.memory_space<vmem>>, vector<1x8x16xbf16>
    %76 = vector.shape_cast %75 : vector<1x8x16xbf16> to vector<8x16xbf16>
    %77 = vector.shape_cast %74 : vector<8x16xbf16> to vector<1x8x16xbf16>
    tpu.vector_store %arg19[%c1_38, %c0_39, %c0_40], %77 {strides = array<i32>} : memref<4x8x16xbf16, #tpu.memory_space<vmem>>, vector<1x8x16xbf16>,
    %78 = vector.extract_strided_slice %48 {offsets = [0, 144], sizes = [8, 16], strides = [1, 1]} : vector<8x192xf32> to vector<8x16xf32>
    %79 = arith.truncf %78 : vector<8x16xf32> to vector<8x16xbf16>
    %c1_41 = arith.constant 1 : index
    %c0_42 = arith.constant 0 : index
    %c0_43 = arith.constant 0 : index
    %80 = vector.load %arg20[%c1_41, %c0_42, %c0_43] : memref<4x8x16xbf16, #tpu.memory_space<vmem>>, vector<1x8x16xbf16>
    %81 = vector.shape_cast %80 : vector<1x8x16xbf16> to vector<8x16xbf16>
    %82 = vector.shape_cast %79 : vector<8x16xbf16> to vector<1x8x16xbf16>
    tpu.vector_store %arg20[%c1_41, %c0_42, %c0_43], %82 {strides = array<i32>} : memref<4x8x16xbf16, #tpu.memory_space<vmem>>, vector<1x8x16xbf16>,
    %83 = vector.extract_strided_slice %48 {offsets = [0, 32], sizes = [8, 16], strides = [1, 1]} : vector<8x192xf32> to vector<8x16xf32>
    %cst_44 = arith.constant 2.500000e-01 : f32
    %84 = vector.broadcast %cst_44 : f32 to vector<8x16xf32>
    %85 = arith.mulf %83, %84 : vector<8x16xf32>
    %86 = arith.truncf %85 : vector<8x16xf32> to vector<8x16xbf16>
    %c2 = arith.constant 2 : index
    %c0_45 = arith.constant 0 : index
    %c0_46 = arith.constant 0 : index
    %87 = vector.load %arg18[%c2, %c0_45, %c0_46] : memref<4x8x16xbf16, #tpu.memory_space<vmem>>, vector<1x8x16xbf16>
    %88 = vector.shape_cast %87 : vector<1x8x16xbf16> to vector<8x16xbf16>
    %89 = vector.shape_cast %86 : vector<8x16xbf16> to vector<1x8x16xbf16>
    tpu.vector_store %arg18[%c2, %c0_45, %c0_46], %89 {strides = array<i32>} : memref<4x8x16xbf16, #tpu.memory_space<vmem>>, vector<1x8x16xbf16>,
    %90 = vector.extract_strided_slice %48 {offsets = [0, 96], sizes = [8, 16], strides = [1, 1]} : vector<8x192xf32> to vector<8x16xf32>
    %91 = arith.truncf %90 : vector<8x16xf32> to vector<8x16xbf16>
    %c2_47 = arith.constant 2 : index
    %c0_48 = arith.constant 0 : index
    %c0_49 = arith.constant 0 : index
    %92 = vector.load %arg19[%c2_47, %c0_48, %c0_49] : memref<4x8x16xbf16, #tpu.memory_space<vmem>>, vector<1x8x16xbf16>
    %93 = vector.shape_cast %92 : vector<1x8x16xbf16> to vector<8x16xbf16>
    %94 = vector.shape_cast %91 : vector<8x16xbf16> to vector<1x8x16xbf16>
    tpu.vector_store %arg19[%c2_47, %c0_48, %c0_49], %94 {strides = array<i32>} : memref<4x8x16xbf16, #tpu.memory_space<vmem>>, vector<1x8x16xbf16>,
    %95 = vector.extract_strided_slice %48 {offsets = [0, 160], sizes = [8, 16], strides = [1, 1]} : vector<8x192xf32> to vector<8x16xf32>
    %96 = arith.truncf %95 : vector<8x16xf32> to vector<8x16xbf16>
    %c2_50 = arith.constant 2 : index
    %c0_51 = arith.constant 0 : index
    %c0_52 = arith.constant 0 : index
    %97 = vector.load %arg20[%c2_50, %c0_51, %c0_52] : memref<4x8x16xbf16, #tpu.memory_space<vmem>>, vector<1x8x16xbf16>
    %98 = vector.shape_cast %97 : vector<1x8x16xbf16> to vector<8x16xbf16>
    %99 = vector.shape_cast %96 : vector<8x16xbf16> to vector<1x8x16xbf16>
    tpu.vector_store %arg20[%c2_50, %c0_51, %c0_52], %99 {strides = array<i32>} : memref<4x8x16xbf16, #tpu.memory_space<vmem>>, vector<1x8x16xbf16>,
    %100 = vector.extract_strided_slice %48 {offsets = [0, 48], sizes = [8, 16], strides = [1, 1]} : vector<8x192xf32> to vector<8x16xf32>
    %cst_53 = arith.constant 2.500000e-01 : f32
    %101 = vector.broadcast %cst_53 : f32 to vector<8x16xf32>
    %102 = arith.mulf %100, %101 : vector<8x16xf32>
    %103 = arith.truncf %102 : vector<8x16xf32> to vector<8x16xbf16>
    %c3 = arith.constant 3 : index
    %c0_54 = arith.constant 0 : index
    %c0_55 = arith.constant 0 : index
    %104 = vector.load %arg18[%c3, %c0_54, %c0_55] : memref<4x8x16xbf16, #tpu.memory_space<vmem>>, vector<1x8x16xbf16>
    %105 = vector.shape_cast %104 : vector<1x8x16xbf16> to vector<8x16xbf16>
    %106 = vector.shape_cast %103 : vector<8x16xbf16> to vector<1x8x16xbf16>
    tpu.vector_store %arg18[%c3, %c0_54, %c0_55], %106 {strides = array<i32>} : memref<4x8x16xbf16, #tpu.memory_space<vmem>>, vector<1x8x16xbf16>,
    %107 = vector.extract_strided_slice %48 {offsets = [0, 112], sizes = [8, 16], strides = [1, 1]} : vector<8x192xf32> to vector<8x16xf32>
    %108 = arith.truncf %107 : vector<8x16xf32> to vector<8x16xbf16>
    %c3_56 = arith.constant 3 : index
    %c0_57 = arith.constant 0 : index
    %c0_58 = arith.constant 0 : index
    %109 = vector.load %arg19[%c3_56, %c0_57, %c0_58] : memref<4x8x16xbf16, #tpu.memory_space<vmem>>, vector<1x8x16xbf16>
    %110 = vector.shape_cast %109 : vector<1x8x16xbf16> to vector<8x16xbf16>
    %111 = vector.shape_cast %108 : vector<8x16xbf16> to vector<1x8x16xbf16>
    tpu.vector_store %arg19[%c3_56, %c0_57, %c0_58], %111 {strides = array<i32>} : memref<4x8x16xbf16, #tpu.memory_space<vmem>>, vector<1x8x16xbf16>,
    %112 = vector.extract_strided_slice %48 {offsets = [0, 176], sizes = [8, 16], strides = [1, 1]} : vector<8x192xf32> to vector<8x16xf32>
    %113 = arith.truncf %112 : vector<8x16xf32> to vector<8x16xbf16>
    %c3_59 = arith.constant 3 : index
    %c0_60 = arith.constant 0 : index
    %c0_61 = arith.constant 0 : index
    %114 = vector.load %arg20[%c3_59, %c0_60, %c0_61] : memref<4x8x16xbf16, #tpu.memory_space<vmem>>, vector<1x8x16xbf16>
    %115 = vector.shape_cast %114 : vector<1x8x16xbf16> to vector<8x16xbf16>
    %116 = vector.shape_cast %113 : vector<8x16xbf16> to vector<1x8x16xbf16>
    tpu.vector_store %arg20[%c3_59, %c0_60, %c0_61], %116 {strides = array<i32>} : memref<4x8x16xbf16, #tpu.memory_space<vmem>>, vector<1x8x16xbf16>,
    %c0_i32_62 = arith.constant 0 : i32
    %c4_i32 = arith.constant 4 : i32
    %117 = arith.addi %c0_i32_62, %c4_i32 : i32
    %c1_i32 = arith.constant 1 : i32
    scf.for %arg23 = %c0_i32_62 to %117 step %c1_i32  : i32 {
      %187 = arith.index_cast %arg23 : i32 to index
      %c0_111 = arith.constant 0 : index
      %c0_112 = arith.constant 0 : index
      %188 = vector.load %arg18[%187, %c0_111, %c0_112] : memref<4x8x16xbf16, #tpu.memory_space<vmem>>, vector<1x8x16xbf16>
      %189 = vector.shape_cast %188 : vector<1x8x16xbf16> to vector<8x16xbf16>
      %190 = arith.index_cast %arg23 : i32 to index
      %c0_113 = arith.constant 0 : index
      %c0_114 = arith.constant 0 : index
      %191 = vector.load %arg19[%190, %c0_113, %c0_114] : memref<4x8x16xbf16, #tpu.memory_space<vmem>>, vector<1x8x16xbf16>
      %192 = vector.shape_cast %191 : vector<1x8x16xbf16> to vector<8x16xbf16>
      %193 = arith.index_cast %arg23 : i32 to index
      %c0_115 = arith.constant 0 : index
      %c0_116 = arith.constant 0 : index
      %194 = vector.load %arg20[%193, %c0_115, %c0_116] : memref<4x8x16xbf16, #tpu.memory_space<vmem>>, vector<1x8x16xbf16>
      %195 = vector.shape_cast %194 : vector<1x8x16xbf16> to vector<8x16xbf16>
      %cst_117 = arith.constant dense<0.000000e+00> : vector<8x8xf32>
      %196 = tpu.matmul %189, %192, %cst_117 {dimension_numbers = #tpu.dot_dimension_numbers<[1], [1], [0], [0], [0, 0, 1, 0], [], []>} : vector<8x16xbf16>, vector<8x16xbf16>, vector<8x8xf32> -> vector<8x8xf32>
      %cst_118 = arith.constant -1.000000e+09 : f32
      %197 = vector.broadcast %cst_118 : f32 to vector<8x8xf32>
      %198 = arith.select %18, %196, %197 : vector<8x8xi1>, vector<8x8xf32>
      %cst_119 = arith.constant dense<0xFF800000> : vector<8xf32>
      %199 = vector.multi_reduction <maximumf>, %198, %cst_119 [1] : vector<8x8xf32> to vector<8xf32>
      %200 = vector.shape_cast %199 : vector<8xf32> to vector<8x1xf32>
      %201 = vector.broadcast %200 : vector<8x1xf32> to vector<8x8xf32>
      %202 = arith.subf %198, %201 : vector<8x8xf32>
      %203 = math.exp %202 : vector<8x8xf32>
      %cst_120 = arith.constant dense<0.000000e+00> : vector<8xf32>
      %204 = vector.multi_reduction <add>, %203, %cst_120 [1] : vector<8x8xf32> to vector<8xf32>
      %205 = vector.shape_cast %204 : vector<8xf32> to vector<8x1xf32>
      %206 = arith.truncf %203 : vector<8x8xf32> to vector<8x8xbf16>
      %cst_121 = arith.constant dense<0.000000e+00> : vector<8x16xf32>
      %207 = tpu.matmul %206, %195, %cst_121 {dimension_numbers = #tpu.dot_dimension_numbers<[1], [0], [0], [1], [0, 0, 1, 1], [], []>} : vector<8x8xbf16>, vector<8x16xbf16>, vector<8x16xf32> -> vector<8x16xf32>
      %208 = tpu.reciprocal %205 {approx = true} : vector<8x1xf32> -> vector<8x1xf32>
      %209 = vector.broadcast %208 : vector<8x1xf32> to vector<8x16xf32>
      %210 = arith.mulf %207, %209 : vector<8x16xf32>
      %211 = arith.truncf %210 : vector<8x16xf32> to vector<8x16xbf16>
      %212 = arith.index_cast %arg23 : i32 to index
      %c0_122 = arith.constant 0 : index
      %c0_123 = arith.constant 0 : index
      %213 = vector.load %arg21[%212, %c0_122, %c0_123] : memref<4x8x16xbf16, #tpu.memory_space<vmem>>, vector<1x8x16xbf16>
      %214 = vector.shape_cast %213 : vector<1x8x16xbf16> to vector<8x16xbf16>
      %215 = vector.shape_cast %211 : vector<8x16xbf16> to vector<1x8x16xbf16>
      tpu.vector_store %arg21[%212, %c0_122, %c0_123], %215 {strides = array<i32>} : memref<4x8x16xbf16, #tpu.memory_space<vmem>>, vector<1x8x16xbf16>,
    }
    %c4_i32_63 = arith.constant 4 : i32
    %c0_64 = arith.constant 0 : index
    %c0_65 = arith.constant 0 : index
    %c0_66 = arith.constant 0 : index
    %118 = vector.load %arg21[%c0_64, %c0_65, %c0_66] : memref<4x8x16xbf16, #tpu.memory_space<vmem>>, vector<1x8x16xbf16>
    %119 = vector.shape_cast %118 : vector<1x8x16xbf16> to vector<8x16xbf16>
    %c0_67 = arith.constant 0 : index
    %c0_68 = arith.constant 0 : index
    %120 = vector.load %arg22[%c0_67, %c0_68] : memref<8x64xbf16, #tpu.memory_space<vmem>>, vector<8x16xbf16>
    tpu.vector_store %arg22[%c0_67, %c0_68], %119 {strides = array<i32>} : memref<8x64xbf16, #tpu.memory_space<vmem>>, vector<8x16xbf16>,
    %c1_69 = arith.constant 1 : index
    %c0_70 = arith.constant 0 : index
    %c0_71 = arith.constant 0 : index
    %121 = vector.load %arg21[%c1_69, %c0_70, %c0_71] : memref<4x8x16xbf16, #tpu.memory_space<vmem>>, vector<1x8x16xbf16>
    %122 = vector.shape_cast %121 : vector<1x8x16xbf16> to vector<8x16xbf16>
    %c0_72 = arith.constant 0 : index
    %c16 = arith.constant 16 : index
    %123 = vector.load %arg22[%c0_72, %c16] : memref<8x64xbf16, #tpu.memory_space<vmem>>, vector<8x16xbf16>
    tpu.vector_store %arg22[%c0_72, %c16], %122 {strides = array<i32>} : memref<8x64xbf16, #tpu.memory_space<vmem>>, vector<8x16xbf16>,
    %c2_73 = arith.constant 2 : index
    %c0_74 = arith.constant 0 : index
    %c0_75 = arith.constant 0 : index
    %124 = vector.load %arg21[%c2_73, %c0_74, %c0_75] : memref<4x8x16xbf16, #tpu.memory_space<vmem>>, vector<1x8x16xbf16>
    %125 = vector.shape_cast %124 : vector<1x8x16xbf16> to vector<8x16xbf16>
    %c0_76 = arith.constant 0 : index
    %c32 = arith.constant 32 : index
    %126 = vector.load %arg22[%c0_76, %c32] : memref<8x64xbf16, #tpu.memory_space<vmem>>, vector<8x16xbf16>
    tpu.vector_store %arg22[%c0_76, %c32], %125 {strides = array<i32>} : memref<8x64xbf16, #tpu.memory_space<vmem>>, vector<8x16xbf16>,
    %c3_77 = arith.constant 3 : index
    %c0_78 = arith.constant 0 : index
    %c0_79 = arith.constant 0 : index
    %127 = vector.load %arg21[%c3_77, %c0_78, %c0_79] : memref<4x8x16xbf16, #tpu.memory_space<vmem>>, vector<1x8x16xbf16>
    %128 = vector.shape_cast %127 : vector<1x8x16xbf16> to vector<8x16xbf16>
    %c0_80 = arith.constant 0 : index
    %c48 = arith.constant 48 : index
    %129 = vector.load %arg22[%c0_80, %c48] : memref<8x64xbf16, #tpu.memory_space<vmem>>, vector<8x16xbf16>
    tpu.vector_store %arg22[%c0_80, %c48], %128 {strides = array<i32>} : memref<8x64xbf16, #tpu.memory_space<vmem>>, vector<8x16xbf16>,
    %c0_81 = arith.constant 0 : index
    %c0_82 = arith.constant 0 : index
    %130 = vector.load %arg22[%c0_81, %c0_82] : memref<8x64xbf16, #tpu.memory_space<vmem>>, vector<8x64xbf16>
    %c0_83 = arith.constant 0 : index
    %c0_84 = arith.constant 0 : index
    %131 = vector.load %arg9[%c0_83, %c0_84] : memref<64x64xbf16, #tpu.memory_space<vmem>>, vector<64x64xbf16>
    %cst_85 = arith.constant dense<0.000000e+00> : vector<8x64xf32>
    %132 = tpu.matmul %130, %131, %cst_85 {dimension_numbers = #tpu.dot_dimension_numbers<[1], [0], [0], [1], [0, 0, 1, 1], [], []>} : vector<8x64xbf16>, vector<64x64xbf16>, vector<8x64xf32> -> vector<8x64xf32>
    %c0_86 = arith.constant 0 : index
    %c0_87 = arith.constant 0 : index
    %133 = vector.load %arg10[%c0_86, %c0_87] : memref<1x64xf32, #tpu.memory_space<vmem>>, vector<1x64xf32>
    %134 = vector.broadcast %133 : vector<1x64xf32> to vector<8x64xf32>
    %135 = arith.addf %132, %134 : vector<8x64xf32>
    %136 = vector.broadcast %4 : vector<1x64xf32> to vector<8x64xf32>
    %137 = arith.mulf %136, %135 : vector<8x64xf32>
    %138 = arith.addf %1, %137 : vector<8x64xf32>
    %c0_88 = arith.constant 0 : index
    %c0_89 = arith.constant 0 : index
    %139 = vector.load %arg11[%c0_88, %c0_89] : memref<1x64xf32, #tpu.memory_space<vmem>>, vector<1x64xf32>
    %c0_90 = arith.constant 0 : index
    %c0_91 = arith.constant 0 : index
    %140 = vector.load %arg12[%c0_90, %c0_91] : memref<1x64xf32, #tpu.memory_space<vmem>>, vector<1x64xf32>
    %cst_92 = arith.constant dense<0.000000e+00> : vector<8xf32>
    %141 = vector.multi_reduction <add>, %138, %cst_92 [1] : vector<8x64xf32> to vector<8xf32>
    %142 = vector.shape_cast %141 : vector<8xf32> to vector<8x1xf32>
    %cst_93 = arith.constant 6.400000e+01 : f32
    %143 = vector.broadcast %cst_93 : f32 to vector<8x1xf32>
    %144 = arith.divf %142, %143 : vector<8x1xf32>
    %145 = vector.broadcast %144 : vector<8x1xf32> to vector<8x64xf32>
    %146 = arith.subf %138, %145 : vector<8x64xf32>
    %147 = arith.mulf %146, %146 : vector<8x64xf32>
    %cst_94 = arith.constant dense<0.000000e+00> : vector<8xf32>
    %148 = vector.multi_reduction <add>, %147, %cst_94 [1] : vector<8x64xf32> to vector<8xf32>
    %149 = vector.shape_cast %148 : vector<8xf32> to vector<8x1xf32>
    %cst_95 = arith.constant 6.400000e+01 : f32
    %150 = vector.broadcast %cst_95 : f32 to vector<8x1xf32>
    %151 = arith.divf %149, %150 : vector<8x1xf32>
    %152 = vector.broadcast %144 : vector<8x1xf32> to vector<8x64xf32>
    %153 = arith.subf %138, %152 : vector<8x64xf32>
    %cst_96 = arith.constant 9.99999997E-7 : f32
    %154 = vector.broadcast %cst_96 : f32 to vector<8x1xf32>
    %155 = arith.addf %151, %154 : vector<8x1xf32>
    %156 = math.rsqrt %155 : vector<8x1xf32>
    %157 = vector.broadcast %156 : vector<8x1xf32> to vector<8x64xf32>
    %158 = arith.mulf %153, %157 : vector<8x64xf32>
    %159 = vector.broadcast %139 : vector<1x64xf32> to vector<8x64xf32>
    %160 = arith.mulf %158, %159 : vector<8x64xf32>
    %161 = vector.broadcast %140 : vector<1x64xf32> to vector<8x64xf32>
    %162 = arith.addf %160, %161 : vector<8x64xf32>
    %163 = arith.truncf %162 : vector<8x64xf32> to vector<8x64xbf16>
    %c0_97 = arith.constant 0 : index
    %c0_98 = arith.constant 0 : index
    %164 = vector.load %arg13[%c0_97, %c0_98] : memref<64x256xbf16, #tpu.memory_space<vmem>>, vector<64x256xbf16>
    %cst_99 = arith.constant dense<0.000000e+00> : vector<8x256xf32>
    %165 = tpu.matmul %163, %164, %cst_99 {dimension_numbers = #tpu.dot_dimension_numbers<[1], [0], [0], [1], [0, 0, 1, 1], [], []>} : vector<8x64xbf16>, vector<64x256xbf16>, vector<8x256xf32> -> vector<8x256xf32>
    %c0_100 = arith.constant 0 : index
    %c0_101 = arith.constant 0 : index
    %166 = vector.load %arg14[%c0_100, %c0_101] : memref<1x256xf32, #tpu.memory_space<vmem>>, vector<1x256xf32>
    %167 = vector.broadcast %166 : vector<1x256xf32> to vector<8x256xf32>
    %168 = arith.addf %165, %167 : vector<8x256xf32>
    %169 = arith.negf %168 : vector<8x256xf32>
    %170 = math.exp %169 : vector<8x256xf32>
    %cst_102 = arith.constant 1.000000e+00 : f32
    %171 = vector.broadcast %cst_102 : f32 to vector<8x256xf32>
    %172 = arith.addf %171, %170 : vector<8x256xf32>
    %173 = arith.divf %171, %172 : vector<8x256xf32>
    %174 = arith.mulf %168, %173 : vector<8x256xf32>
    %175 = arith.truncf %174 : vector<8x256xf32> to vector<8x256xbf16>
    %c0_103 = arith.constant 0 : index
    %c0_104 = arith.constant 0 : index
    %176 = vector.load %arg15[%c0_103, %c0_104] : memref<256x64xbf16, #tpu.memory_space<vmem>>, vector<256x64xbf16>
    %cst_105 = arith.constant dense<0.000000e+00> : vector<8x64xf32>
    %177 = tpu.matmul %175, %176, %cst_105 {dimension_numbers = #tpu.dot_dimension_numbers<[1], [0], [0], [1], [0, 0, 1, 1], [], []>} : vector<8x256xbf16>, vector<256x64xbf16>, vector<8x64xf32> -> vector<8x64xf32>
    %c0_106 = arith.constant 0 : index
    %c0_107 = arith.constant 0 : index
    %178 = vector.load %arg16[%c0_106, %c0_107] : memref<1x64xf32, #tpu.memory_space<vmem>>, vector<1x64xf32>
    %179 = vector.broadcast %178 : vector<1x64xf32> to vector<8x64xf32>
    %180 = arith.addf %177, %179 : vector<8x64xf32>
    %181 = vector.broadcast %5 : vector<1x64xf32> to vector<8x64xf32>
    %182 = arith.mulf %181, %180 : vector<8x64xf32>
    %183 = arith.addf %138, %182 : vector<8x64xf32>
    %c0_108 = arith.constant 0 : index
    %c0_109 = arith.constant 0 : index
    %c0_110 = arith.constant 0 : index
    %184 = vector.load %arg17[%c0_108, %c0_109, %c0_110] : memref<1x8x64xf32, #tpu.memory_space<vmem>>, vector<1x8x64xf32>
    %185 = vector.shape_cast %184 : vector<1x8x64xf32> to vector<8x64xf32>
    %186 = vector.shape_cast %183 : vector<8x64xf32> to vector<1x8x64xf32>
    tpu.vector_store %arg17[%c0_108, %c0_109, %c0_110], %186 {strides = array<i32>} : memref<1x8x64xf32, #tpu.memory_space<vmem>>, vector<1x8x64xf32>,
    return
  }
  func.func @transform_0(%arg0: i32) -> (i32, i32, i32) {
    %c0_i32 = arith.constant 0 : i32
    %c0_i32_0 = arith.constant 0 : i32
    %c0_i32_1 = arith.constant 0 : i32
    return %arg0, %c0_i32, %c0_i32_0 : i32, i32, i32
  }
  func.func @transform_1(%arg0: i32) -> (i32, i32, i32) {
    %c0_i32 = arith.constant 0 : i32
    %c0_i32_0 = arith.constant 0 : i32
    %c0_i32_1 = arith.constant 0 : i32
    return %arg0, %c0_i32, %c0_i32_0 : i32, i32, i32
  }
  func.func @transform_2(%arg0: i32) -> (i32, i32, i32) {
    %c0_i32 = arith.constant 0 : i32
    %c0_i32_0 = arith.constant 0 : i32
    %c0_i32_1 = arith.constant 0 : i32
    return %arg0, %c0_i32, %c0_i32_0 : i32, i32, i32
  }
  func.func @transform_3(%arg0: i32) -> (i32, i32, i32) {
    %c0_i32 = arith.constant 0 : i32
    %c0_i32_0 = arith.constant 0 : i32
    %c0_i32_1 = arith.constant 0 : i32
    return %arg0, %c0_i32, %c0_i32_0 : i32, i32, i32
  }
  func.func @transform_4(%arg0: i32) -> (i32, i32) {
    %c0_i32 = arith.constant 0 : i32
    %c0_i32_0 = arith.constant 0 : i32
    %c0_i32_1 = arith.constant 0 : i32
    return %c0_i32, %c0_i32_0 : i32, i32
  }
  func.func @transform_5(%arg0: i32) -> (i32, i32) {
    %c0_i32 = arith.constant 0 : i32
    %c0_i32_0 = arith.constant 0 : i32
    %c0_i32_1 = arith.constant 0 : i32
    return %c0_i32, %c0_i32_0 : i32, i32
  }
  func.func @transform_6(%arg0: i32) -> (i32, i32) {
    %c0_i32 = arith.constant 0 : i32
    %c0_i32_0 = arith.constant 0 : i32
    %c0_i32_1 = arith.constant 0 : i32
    return %c0_i32, %c0_i32_0 : i32, i32
  }
  func.func @transform_7(%arg0: i32) -> (i32, i32) {
    %c0_i32 = arith.constant 0 : i32
    %c0_i32_0 = arith.constant 0 : i32
    %c0_i32_1 = arith.constant 0 : i32
    return %c0_i32, %c0_i32_0 : i32, i32
  }
  func.func @transform_8(%arg0: i32) -> (i32, i32) {
    %c0_i32 = arith.constant 0 : i32
    %c0_i32_0 = arith.constant 0 : i32
    %c0_i32_1 = arith.constant 0 : i32
    return %c0_i32, %c0_i32_0 : i32, i32
  }
  func.func @transform_9(%arg0: i32) -> (i32, i32) {
    %c0_i32 = arith.constant 0 : i32
    %c0_i32_0 = arith.constant 0 : i32
    %c0_i32_1 = arith.constant 0 : i32
    return %c0_i32, %c0_i32_0 : i32, i32
  }
  func.func @transform_10(%arg0: i32) -> (i32, i32) {
    %c0_i32 = arith.constant 0 : i32
    %c0_i32_0 = arith.constant 0 : i32
    %c0_i32_1 = arith.constant 0 : i32
    return %c0_i32, %c0_i32_0 : i32, i32
  }
  func.func @transform_11(%arg0: i32) -> (i32, i32) {
    %c0_i32 = arith.constant 0 : i32
    %c0_i32_0 = arith.constant 0 : i32
    %c0_i32_1 = arith.constant 0 : i32
    return %c0_i32, %c0_i32_0 : i32, i32
  }
  func.func @transform_12(%arg0: i32) -> (i32, i32) {
    %c0_i32 = arith.constant 0 : i32
    %c0_i32_0 = arith.constant 0 : i32
    %c0_i32_1 = arith.constant 0 : i32
    return %c0_i32, %c0_i32_0 : i32, i32
  }
  func.func @transform_13(%arg0: i32) -> (i32, i32) {
    %c0_i32 = arith.constant 0 : i32
    %c0_i32_0 = arith.constant 0 : i32
    %c0_i32_1 = arith.constant 0 : i32
    return %c0_i32, %c0_i32_0 : i32, i32
  }
  func.func @transform_14(%arg0: i32) -> (i32, i32) {
    %c0_i32 = arith.constant 0 : i32
    %c0_i32_0 = arith.constant 0 : i32
    %c0_i32_1 = arith.constant 0 : i32
    return %c0_i32, %c0_i32_0 : i32, i32
  }
  func.func @transform_15(%arg0: i32) -> (i32, i32) {
    %c0_i32 = arith.constant 0 : i32
    %c0_i32_0 = arith.constant 0 : i32
    %c0_i32_1 = arith.constant 0 : i32
    return %c0_i32, %c0_i32_0 : i32, i32
  }
  func.func @transform_16(%arg0: i32) -> (i32, i32, i32) {
    %c0_i32 = arith.constant 0 : i32
    %c0_i32_0 = arith.constant 0 : i32
    %c0_i32_1 = arith.constant 0 : i32
    return %arg0, %c0_i32, %c0_i32_0 : i32, i32, i32
  }
}

module attributes {stable_mosaic.version = 11 : i64} {
  func.func @token_refiner_block_kernel(%arg0: i32, %arg1: memref<1x8x64xf32, #tpu.memory_space<vmem>>, %arg2: memref<1x1x128xf32, #tpu.memory_space<vmem>>, %arg3: memref<1x1x8xf32, #tpu.memory_space<vmem>>, %arg4: memref<1x8x1xf32, #tpu.memory_space<vmem>>, %arg5: memref<1x64xf32, #tpu.memory_space<vmem>>, %arg6: memref<1x64xf32, #tpu.memory_space<vmem>>, %arg7: memref<64x192xbf16, #tpu.memory_space<vmem>>, %arg8: memref<1x192xf32, #tpu.memory_space<vmem>>, %arg9: memref<64x64xbf16, #tpu.memory_space<vmem>>, %arg10: memref<1x64xf32, #tpu.memory_space<vmem>>, %arg11: memref<1x64xf32, #tpu.memory_space<vmem>>, %arg12: memref<1x64xf32, #tpu.memory_space<vmem>>, %arg13: memref<64x256xbf16, #tpu.memory_space<vmem>>, %arg14: memref<1x256xf32, #tpu.memory_space<vmem>>, %arg15: memref<256x64xbf16, #tpu.memory_space<vmem>>, %arg16: memref<1x64xf32, #tpu.memory_space<vmem>>, %arg17: memref<1x8x64xf32, #tpu.memory_space<vmem>>, %arg18: memref<4x8x16xbf16, #tpu.memory_space<vmem>>, %arg19: memref<4x8x16xbf16, #tpu.memory_space<vmem>>, %arg20: memref<4x8x16xbf16, #tpu.memory_space<vmem>>, %arg21: memref<4x8x16xbf16, #tpu.memory_space<vmem>>, %arg22: memref<8x64xbf16, #tpu.memory_space<vmem>>) attributes {dimension_semantics = [#tpu.dimension_semantics<parallel>], iteration_bounds = array<i64: 2>, scalar_prefetch = 0 : i64, scratch_operands = 5 : i64, tpu.core_type = #tpu.core_type<tc>, window_params = [{transform_indices = @transform_0, window_bounds = array<i64: 1, 8, 64>}, {transform_indices = @transform_1, window_bounds = array<i64: 1, 1, 128>}, {transform_indices = @transform_2, window_bounds = array<i64: 1, 1, 8>}, {transform_indices = @transform_3, window_bounds = array<i64: 1, 8, 1>}, {pipeline_mode = #tpu.pipeline_mode<synchronous>, transform_indices = @transform_4, window_bounds = array<i64: 1, 64>}, {pipeline_mode = #tpu.pipeline_mode<synchronous>, transform_indices = @transform_5, window_bounds = array<i64: 1, 64>}, {pipeline_mode = #tpu.pipeline_mode<synchronous>, transform_indices = @transform_6, window_bounds = array<i64: 64, 192>}, {pipeline_mode = #tpu.pipeline_mode<synchronous>, transform_indices = @transform_7, window_bounds = array<i64: 1, 192>}, {pipeline_mode = #tpu.pipeline_mode<synchronous>, transform_indices = @transform_8, window_bounds = array<i64: 64, 64>}, {pipeline_mode = #tpu.pipeline_mode<synchronous>, transform_indices = @transform_9, window_bounds = array<i64: 1, 64>}, {pipeline_mode = #tpu.pipeline_mode<synchronous>, transform_indices = @transform_10, window_bounds = array<i64: 1, 64>}, {pipeline_mode = #tpu.pipeline_mode<synchronous>, transform_indices = @transform_11, window_bounds = array<i64: 1, 64>}, {pipeline_mode = #tpu.pipeline_mode<synchronous>, transform_indices = @transform_12, window_bounds = array<i64: 64, 256>}, {pipeline_mode = #tpu.pipeline_mode<synchronous>, transform_indices = @transform_13, window_bounds = array<i64: 1, 256>}, {pipeline_mode = #tpu.pipeline_mode<synchronous>, transform_indices = @transform_14, window_bounds = array<i64: 256, 64>}, {pipeline_mode = #tpu.pipeline_mode<synchronous>, transform_indices = @transform_15, window_bounds = array<i64: 1, 64>}, {transform_indices = @transform_16, window_bounds = array<i64: 1, 8, 64>}]} {
    %c0 = arith.constant 0 : index
    %c0_0 = arith.constant 0 : index
    %c0_1 = arith.constant 0 : index
    %0 = vector.load %arg1[%c0, %c0_0, %c0_1] : memref<1x8x64xf32, #tpu.memory_space<vmem>>, vector<1x8x64xf32>
    %1 = vector.shape_cast %0 : vector<1x8x64xf32> to vector<8x64xf32>
    %c0_2 = arith.constant 0 : index
    %c0_3 = arith.constant 0 : index
    %c0_4 = arith.constant 0 : index
    %2 = vector.load %arg2[%c0_2, %c0_3, %c0_4] : memref<1x1x128xf32, #tpu.memory_space<vmem>>, vector<1x1x128xf32>
    %3 = vector.shape_cast %2 : vector<1x1x128xf32> to vector<1x128xf32>
    %4 = vector.extract_strided_slice %3 {offsets = [0, 0], sizes = [1, 64], strides = [1, 1]} : vector<1x128xf32> to vector<1x64xf32>
    %5 = vector.extract_strided_slice %3 {offsets = [0, 64], sizes = [1, 64], strides = [1, 1]} : vector<1x128xf32> to vector<1x64xf32>
    %c0_5 = arith.constant 0 : index
    %c0_6 = arith.constant 0 : index
    %c0_7 = arith.constant 0 : index
    %6 = vector.load %arg3[%c0_5, %c0_6, %c0_7] : memref<1x1x8xf32, #tpu.memory_space<vmem>>, vector<1x1x8xf32>
    %7 = vector.shape_cast %6 : vector<1x1x8xf32> to vector<1x8xf32>
    %c0_8 = arith.constant 0 : index
    %c0_9 = arith.constant 0 : index
    %c0_10 = arith.constant 0 : index
    %8 = vector.load %arg4[%c0_8, %c0_9, %c0_10] : memref<1x8x1xf32, #tpu.memory_space<vmem>>, vector<1x8x1xf32>
    %9 = vector.shape_cast %8 : vector<1x8x1xf32> to vector<8x1xf32>
    %10 = tpu.iota {dimensions = array<i32: 1>} : vector<8x8xi32>
    %c0_i32 = arith.constant 0 : i32
    %11 = vector.broadcast %c0_i32 : i32 to vector<8x8xi32>
    %12 = arith.cmpi eq, %10, %11 : vector<8x8xi32>
    %13 = vector.broadcast %9 : vector<8x1xf32> to vector<8x8xf32>
    %14 = vector.broadcast %7 : vector<1x8xf32> to vector<8x8xf32>
    %15 = arith.mulf %13, %14 : vector<8x8xf32>
    %cst = arith.constant 5.000000e-01 : f32
    %16 = vector.broadcast %cst : f32 to vector<8x8xf32>
    %17 = arith.cmpf ogt, %15, %16 : vector<8x8xf32>
    %18 = arith.ori %17, %12 : vector<8x8xi1>
    %c0_11 = arith.constant 0 : index
    %c0_12 = arith.constant 0 : index
    %19 = vector.load %arg5[%c0_11, %c0_12] : memref<1x64xf32, #tpu.memory_space<vmem>>, vector<1x64xf32>
    %c0_13 = arith.constant 0 : index
    %c0_14 = arith.constant 0 : index
    %20 = vector.load %arg6[%c0_13, %c0_14] : memref<1x64xf32, #tpu.memory_space<vmem>>, vector<1x64xf32>
    %cst_15 = arith.constant dense<0.000000e+00> : vector<8xf32>
    %21 = vector.multi_reduction <add>, %1, %cst_15 [1] : vector<8x64xf32> to vector<8xf32>
    %22 = vector.shape_cast %21 : vector<8xf32> to vector<8x1xf32>
    %cst_16 = arith.constant 6.400000e+01 : f32
    %23 = vector.broadcast %cst_16 : f32 to vector<8x1xf32>
    %24 = arith.divf %22, %23 : vector<8x1xf32>
    %25 = vector.broadcast %24 : vector<8x1xf32> to vector<8x64xf32>
    %26 = arith.subf %1, %25 : vector<8x64xf32>
    %27 = arith.mulf %26, %26 : vector<8x64xf32>
    %cst_17 = arith.constant dense<0.000000e+00> : vector<8xf32>
    %28 = vector.multi_reduction <add>, %27, %cst_17 [1] : vector<8x64xf32> to vector<8xf32>
    %29 = vector.shape_cast %28 : vector<8xf32> to vector<8x1xf32>
    %cst_18 = arith.constant 6.400000e+01 : f32
    %30 = vector.broadcast %cst_18 : f32 to vector<8x1xf32>
    %31 = arith.divf %29, %30 : vector<8x1xf32>
    %32 = vector.broadcast %24 : vector<8x1xf32> to vector<8x64xf32>
    %33 = arith.subf %1, %32 : vector<8x64xf32>
    %cst_19 = arith.constant 9.99999997E-7 : f32
    %34 = vector.broadcast %cst_19 : f32 to vector<8x1xf32>
    %35 = arith.addf %31, %34 : vector<8x1xf32>
    %36 = math.rsqrt %35 : vector<8x1xf32>
    %37 = vector.broadcast %36 : vector<8x1xf32> to vector<8x64xf32>
    %38 = arith.mulf %33, %37 : vector<8x64xf32>
    %39 = vector.broadcast %19 : vector<1x64xf32> to vector<8x64xf32>
    %40 = arith.mulf %38, %39 : vector<8x64xf32>
    %41 = vector.broadcast %20 : vector<1x64xf32> to vector<8x64xf32>
    %42 = arith.addf %40, %41 : vector<8x64xf32>
    %43 = arith.truncf %42 : vector<8x64xf32> to vector<8x64xbf16>
    %c0_20 = arith.constant 0 : index
    %c0_21 = arith.constant 0 : index
    %44 = vector.load %arg7[%c0_20, %c0_21] : memref<64x192xbf16, #tpu.memory_space<vmem>>, vector<64x192xbf16>
    %cst_22 = arith.constant dense<0.000000e+00> : vector<8x192xf32>
    %45 = tpu.matmul %43, %44, %cst_22 {dimension_numbers = #tpu.dot_dimension_numbers<[1], [0], [0], [1], [0, 0, 1, 1], [], []>} : vector<8x64xbf16>, vector<64x192xbf16>, vector<8x192xf32> -> vector<8x192xf32>
    %c0_23 = arith.constant 0 : index
    %c0_24 = arith.constant 0 : index
    %46 = vector.load %arg8[%c0_23, %c0_24] : memref<1x192xf32, #tpu.memory_space<vmem>>, vector<1x192xf32>
    %47 = vector.broadcast %46 : vector<1x192xf32> to vector<8x192xf32>
    %48 = arith.addf %45, %47 : vector<8x192xf32>
    %49 = vector.extract_strided_slice %48 {offsets = [0, 0], sizes = [8, 16], strides = [1, 1]} : vector<8x192xf32> to vector<8x16xf32>
    %cst_25 = arith.constant 2.500000e-01 : f32
    %50 = vector.broadcast %cst_25 : f32 to vector<8x16xf32>
    %51 = arith.mulf %49, %50 : vector<8x16xf32>
    %52 = arith.truncf %51 : vector<8x16xf32> to vector<8x16xbf16>
    %c0_26 = arith.constant 0 : index
    %c0_27 = arith.constant 0 : index
    %c0_28 = arith.constant 0 : index
    %53 = vector.load %arg18[%c0_26, %c0_27, %c0_28] : memref<4x8x16xbf16, #tpu.memory_space<vmem>>, vector<1x8x16xbf16>
    %54 = vector.shape_cast %53 : vector<1x8x16xbf16> to vector<8x16xbf16>
    %55 = vector.shape_cast %52 : vector<8x16xbf16> to vector<1x8x16xbf16>
    tpu.vector_store %arg18[%c0_26, %c0_27, %c0_28], %55 {strides = array<i32>} : memref<4x8x16xbf16, #tpu.memory_space<vmem>>, vector<1x8x16xbf16>,
    %56 = vector.extract_strided_slice %48 {offsets = [0, 64], sizes = [8, 16], strides = [1, 1]} : vector<8x192xf32> to vector<8x16xf32>
    %57 = arith.truncf %56 : vector<8x16xf32> to vector<8x16xbf16>
    %c0_29 = arith.constant 0 : index
    %c0_30 = arith.constant 0 : index
    %c0_31 = arith.constant 0 : index
    %58 = vector.load %arg19[%c0_29, %c0_30, %c0_31] : memref<4x8x16xbf16, #tpu.memory_space<vmem>>, vector<1x8x16xbf16>
    %59 = vector.shape_cast %58 : vector<1x8x16xbf16> to vector<8x16xbf16>
    %60 = vector.shape_cast %57 : vector<8x16xbf16> to vector<1x8x16xbf16>
    tpu.vector_store %arg19[%c0_29, %c0_30, %c0_31], %60 {strides = array<i32>} : memref<4x8x16xbf16, #tpu.memory_space<vmem>>, vector<1x8x16xbf16>,
    %61 = vector.extract_strided_slice %48 {offsets = [0, 128], sizes = [8, 16], strides = [1, 1]} : vector<8x192xf32> to vector<8x16xf32>
    %62 = arith.truncf %61 : vector<8x16xf32> to vector<8x16xbf16>
    %c0_32 = arith.constant 0 : index
    %c0_33 = arith.constant 0 : index
    %c0_34 = arith.constant 0 : index
    %63 = vector.load %arg20[%c0_32, %c0_33, %c0_34] : memref<4x8x16xbf16, #tpu.memory_space<vmem>>, vector<1x8x16xbf16>
    %64 = vector.shape_cast %63 : vector<1x8x16xbf16> to vector<8x16xbf16>
    %65 = vector.shape_cast %62 : vector<8x16xbf16> to vector<1x8x16xbf16>
    tpu.vector_store %arg20[%c0_32, %c0_33, %c0_34], %65 {strides = array<i32>} : memref<4x8x16xbf16, #tpu.memory_space<vmem>>, vector<1x8x16xbf16>,
    %66 = vector.extract_strided_slice %48 {offsets = [0, 16], sizes = [8, 16], strides = [1, 1]} : vector<8x192xf32> to vector<8x16xf32>
    %cst_35 = arith.constant 2.500000e-01 : f32
    %67 = vector.broadcast %cst_35 : f32 to vector<8x16xf32>
    %68 = arith.mulf %66, %67 : vector<8x16xf32>
    %69 = arith.truncf %68 : vector<8x16xf32> to vector<8x16xbf16>
    %c1 = arith.constant 1 : index
    %c0_36 = arith.constant 0 : index
    %c0_37 = arith.constant 0 : index
    %70 = vector.load %arg18[%c1, %c0_36, %c0_37] : memref<4x8x16xbf16, #tpu.memory_space<vmem>>, vector<1x8x16xbf16>
    %71 = vector.shape_cast %70 : vector<1x8x16xbf16> to vector<8x16xbf16>
    %72 = vector.shape_cast %69 : vector<8x16xbf16> to vector<1x8x16xbf16>
    tpu.vector_store %arg18[%c1, %c0_36, %c0_37], %72 {strides = array<i32>} : memref<4x8x16xbf16, #tpu.memory_space<vmem>>, vector<1x8x16xbf16>,
    %73 = vector.extract_strided_slice %48 {offsets = [0, 80], sizes = [8, 16], strides = [1, 1]} : vector<8x192xf32> to vector<8x16xf32>
    %74 = arith.truncf %73 : vector<8x16xf32> to vector<8x16xbf16>
    %c1_38 = arith.constant 1 : index
    %c0_39 = arith.constant 0 : index
    %c0_40 = arith.constant 0 : index
    %75 = vector.load %arg19[%c1_38, %c0_39, %c0_40] : memref<4x8x16xbf16, #tpu.memory_space<vmem>>, vector<1x8x16xbf16>
    %76 = vector.shape_cast %75 : vector<1x8x16xbf16> to vector<8x16xbf16>
    %77 = vector.shape_cast %74 : vector<8x16xbf16> to vector<1x8x16xbf16>
    tpu.vector_store %arg19[%c1_38, %c0_39, %c0_40], %77 {strides = array<i32>} : memref<4x8x16xbf16, #tpu.memory_space<vmem>>, vector<1x8x16xbf16>,
    %78 = vector.extract_strided_slice %48 {offsets = [0, 144], sizes = [8, 16], strides = [1, 1]} : vector<8x192xf32> to vector<8x16xf32>
    %79 = arith.truncf %78 : vector<8x16xf32> to vector<8x16xbf16>
    %c1_41 = arith.constant 1 : index
    %c0_42 = arith.constant 0 : index
    %c0_43 = arith.constant 0 : index
    %80 = vector.load %arg20[%c1_41, %c0_42, %c0_43] : memref<4x8x16xbf16, #tpu.memory_space<vmem>>, vector<1x8x16xbf16>
    %81 = vector.shape_cast %80 : vector<1x8x16xbf16> to vector<8x16xbf16>
    %82 = vector.shape_cast %79 : vector<8x16xbf16> to vector<1x8x16xbf16>
    tpu.vector_store %arg20[%c1_41, %c0_42, %c0_43], %82 {strides = array<i32>} : memref<4x8x16xbf16, #tpu.memory_space<vmem>>, vector<1x8x16xbf16>,
    %83 = vector.extract_strided_slice %48 {offsets = [0, 32], sizes = [8, 16], strides = [1, 1]} : vector<8x192xf32> to vector<8x16xf32>
    %cst_44 = arith.constant 2.500000e-01 : f32
    %84 = vector.broadcast %cst_44 : f32 to vector<8x16xf32>
    %85 = arith.mulf %83, %84 : vector<8x16xf32>
    %86 = arith.truncf %85 : vector<8x16xf32> to vector<8x16xbf16>
    %c2 = arith.constant 2 : index
    %c0_45 = arith.constant 0 : index
    %c0_46 = arith.constant 0 : index
    %87 = vector.load %arg18[%c2, %c0_45, %c0_46] : memref<4x8x16xbf16, #tpu.memory_space<vmem>>, vector<1x8x16xbf16>
    %88 = vector.shape_cast %87 : vector<1x8x16xbf16> to vector<8x16xbf16>
    %89 = vector.shape_cast %86 : vector<8x16xbf16> to vector<1x8x16xbf16>
    tpu.vector_store %arg18[%c2, %c0_45, %c0_46], %89 {strides = array<i32>} : memref<4x8x16xbf16, #tpu.memory_space<vmem>>, vector<1x8x16xbf16>,
    %90 = vector.extract_strided_slice %48 {offsets = [0, 96], sizes = [8, 16], strides = [1, 1]} : vector<8x192xf32> to vector<8x16xf32>
    %91 = arith.truncf %90 : vector<8x16xf32> to vector<8x16xbf16>
    %c2_47 = arith.constant 2 : index
    %c0_48 = arith.constant 0 : index
    %c0_49 = arith.constant 0 : index
    %92 = vector.load %arg19[%c2_47, %c0_48, %c0_49] : memref<4x8x16xbf16, #tpu.memory_space<vmem>>, vector<1x8x16xbf16>
    %93 = vector.shape_cast %92 : vector<1x8x16xbf16> to vector<8x16xbf16>
    %94 = vector.shape_cast %91 : vector<8x16xbf16> to vector<1x8x16xbf16>
    tpu.vector_store %arg19[%c2_47, %c0_48, %c0_49], %94 {strides = array<i32>} : memref<4x8x16xbf16, #tpu.memory_space<vmem>>, vector<1x8x16xbf16>,
    %95 = vector.extract_strided_slice %48 {offsets = [0, 160], sizes = [8, 16], strides = [1, 1]} : vector<8x192xf32> to vector<8x16xf32>
    %96 = arith.truncf %95 : vector<8x16xf32> to vector<8x16xbf16>
    %c2_50 = arith.constant 2 : index
    %c0_51 = arith.constant 0 : index
    %c0_52 = arith.constant 0 : index
    %97 = vector.load %arg20[%c2_50, %c0_51, %c0_52] : memref<4x8x16xbf16, #tpu.memory_space<vmem>>, vector<1x8x16xbf16>
    %98 = vector.shape_cast %97 : vector<1x8x16xbf16> to vector<8x16xbf16>
    %99 = vector.shape_cast %96 : vector<8x16xbf16> to vector<1x8x16xbf16>
    tpu.vector_store %arg20[%c2_50, %c0_51, %c0_52], %99 {strides = array<i32>} : memref<4x8x16xbf16, #tpu.memory_space<vmem>>, vector<1x8x16xbf16>,
    %100 = vector.extract_strided_slice %48 {offsets = [0, 48], sizes = [8, 16], strides = [1, 1]} : vector<8x192xf32> to vector<8x16xf32>
    %cst_53 = arith.constant 2.500000e-01 : f32
    %101 = vector.broadcast %cst_53 : f32 to vector<8x16xf32>
    %102 = arith.mulf %100, %101 : vector<8x16xf32>
    %103 = arith.truncf %102 : vector<8x16xf32> to vector<8x16xbf16>
    %c3 = arith.constant 3 : index
    %c0_54 = arith.constant 0 : index
    %c0_55 = arith.constant 0 : index
    %104 = vector.load %arg18[%c3, %c0_54, %c0_55] : memref<4x8x16xbf16, #tpu.memory_space<vmem>>, vector<1x8x16xbf16>
    %105 = vector.shape_cast %104 : vector<1x8x16xbf16> to vector<8x16xbf16>
    %106 = vector.shape_cast %103 : vector<8x16xbf16> to vector<1x8x16xbf16>
    tpu.vector_store %arg18[%c3, %c0_54, %c0_55], %106 {strides = array<i32>} : memref<4x8x16xbf16, #tpu.memory_space<vmem>>, vector<1x8x16xbf16>,
    %107 = vector.extract_strided_slice %48 {offsets = [0, 112], sizes = [8, 16], strides = [1, 1]} : vector<8x192xf32> to vector<8x16xf32>
    %108 = arith.truncf %107 : vector<8x16xf32> to vector<8x16xbf16>
    %c3_56 = arith.constant 3 : index
    %c0_57 = arith.constant 0 : index
    %c0_58 = arith.constant 0 : index
    %109 = vector.load %arg19[%c3_56, %c0_57, %c0_58] : memref<4x8x16xbf16, #tpu.memory_space<vmem>>, vector<1x8x16xbf16>
    %110 = vector.shape_cast %109 : vector<1x8x16xbf16> to vector<8x16xbf16>
    %111 = vector.shape_cast %108 : vector<8x16xbf16> to vector<1x8x16xbf16>
    tpu.vector_store %arg19[%c3_56, %c0_57, %c0_58], %111 {strides = array<i32>} : memref<4x8x16xbf16, #tpu.memory_space<vmem>>, vector<1x8x16xbf16>,
    %112 = vector.extract_strided_slice %48 {offsets = [0, 176], sizes = [8, 16], strides = [1, 1]} : vector<8x192xf32> to vector<8x16xf32>
    %113 = arith.truncf %112 : vector<8x16xf32> to vector<8x16xbf16>
    %c3_59 = arith.constant 3 : index
    %c0_60 = arith.constant 0 : index
    %c0_61 = arith.constant 0 : index
    %114 = vector.load %arg20[%c3_59, %c0_60, %c0_61] : memref<4x8x16xbf16, #tpu.memory_space<vmem>>, vector<1x8x16xbf16>
    %115 = vector.shape_cast %114 : vector<1x8x16xbf16> to vector<8x16xbf16>
    %116 = vector.shape_cast %113 : vector<8x16xbf16> to vector<1x8x16xbf16>
    tpu.vector_store %arg20[%c3_59, %c0_60, %c0_61], %116 {strides = array<i32>} : memref<4x8x16xbf16, #tpu.memory_space<vmem>>, vector<1x8x16xbf16>,
    %c0_i32_62 = arith.constant 0 : i32
    %c4_i32 = arith.constant 4 : i32
    %117 = arith.addi %c0_i32_62, %c4_i32 : i32
    %c1_i32 = arith.constant 1 : i32
    scf.for %arg23 = %c0_i32_62 to %117 step %c1_i32  : i32 {
      %187 = arith.index_cast %arg23 : i32 to index
      %c0_111 = arith.constant 0 : index
      %c0_112 = arith.constant 0 : index
      %188 = vector.load %arg18[%187, %c0_111, %c0_112] : memref<4x8x16xbf16, #tpu.memory_space<vmem>>, vector<1x8x16xbf16>
      %189 = vector.shape_cast %188 : vector<1x8x16xbf16> to vector<8x16xbf16>
      %190 = arith.index_cast %arg23 : i32 to index
      %c0_113 = arith.constant 0 : index
      %c0_114 = arith.constant 0 : index
      %191 = vector.load %arg19[%190, %c0_113, %c0_114] : memref<4x8x16xbf16, #tpu.memory_space<vmem>>, vector<1x8x16xbf16>
      %192 = vector.shape_cast %191 : vector<1x8x16xbf16> to vector<8x16xbf16>
      %193 = arith.index_cast %arg23 : i32 to index
      %c0_115 = arith.constant 0 : index
      %c0_116 = arith.constant 0 : index
      %194 = vector.load %arg20[%193, %c0_115, %c0_116] : memref<4x8x16xbf16, #tpu.memory_space<vmem>>, vector<1x8x16xbf16>
      %195 = vector.shape_cast %194 : vector<1x8x16xbf16> to vector<8x16xbf16>
      %cst_117 = arith.constant dense<0.000000e+00> : vector<8x8xf32>
      %196 = tpu.matmul %189, %192, %cst_117 {dimension_numbers = #tpu.dot_dimension_numbers<[1], [1], [0], [0], [0, 0, 1, 0], [], []>} : vector<8x16xbf16>, vector<8x16xbf16>, vector<8x8xf32> -> vector<8x8xf32>
      %cst_118 = arith.constant -1.000000e+09 : f32
      %197 = vector.broadcast %cst_118 : f32 to vector<8x8xf32>
      %198 = arith.select %18, %196, %197 : vector<8x8xi1>, vector<8x8xf32>
      %cst_119 = arith.constant dense<0xFF800000> : vector<8xf32>
      %199 = vector.multi_reduction <maximumf>, %198, %cst_119 [1] : vector<8x8xf32> to vector<8xf32>
      %200 = vector.shape_cast %199 : vector<8xf32> to vector<8x1xf32>
      %201 = vector.broadcast %200 : vector<8x1xf32> to vector<8x8xf32>
      %202 = arith.subf %198, %201 : vector<8x8xf32>
      %203 = math.exp %202 : vector<8x8xf32>
      %cst_120 = arith.constant dense<0.000000e+00> : vector<8xf32>
      %204 = vector.multi_reduction <add>, %203, %cst_120 [1] : vector<8x8xf32> to vector<8xf32>
      %205 = vector.shape_cast %204 : vector<8xf32> to vector<8x1xf32>
      %206 = arith.truncf %203 : vector<8x8xf32> to vector<8x8xbf16>
      %cst_121 = arith.constant dense<0.000000e+00> : vector<8x16xf32>
      %207 = tpu.matmul %206, %195, %cst_121 {dimension_numbers = #tpu.dot_dimension_numbers<[1], [0], [0], [1], [0, 0, 1, 1], [], []>} : vector<8x8xbf16>, vector<8x16xbf16>, vector<8x16xf32> -> vector<8x16xf32>
      %208 = tpu.reciprocal %205 {approx = true} : vector<8x1xf32> -> vector<8x1xf32>
      %209 = vector.broadcast %208 : vector<8x1xf32> to vector<8x16xf32>
      %210 = arith.mulf %207, %209 : vector<8x16xf32>
      %211 = arith.truncf %210 : vector<8x16xf32> to vector<8x16xbf16>
      %212 = arith.index_cast %arg23 : i32 to index
      %c0_122 = arith.constant 0 : index
      %c0_123 = arith.constant 0 : index
      %213 = vector.load %arg21[%212, %c0_122, %c0_123] : memref<4x8x16xbf16, #tpu.memory_space<vmem>>, vector<1x8x16xbf16>
      %214 = vector.shape_cast %213 : vector<1x8x16xbf16> to vector<8x16xbf16>
      %215 = vector.shape_cast %211 : vector<8x16xbf16> to vector<1x8x16xbf16>
      tpu.vector_store %arg21[%212, %c0_122, %c0_123], %215 {strides = array<i32>} : memref<4x8x16xbf16, #tpu.memory_space<vmem>>, vector<1x8x16xbf16>,
    }
    %c4_i32_63 = arith.constant 4 : i32
    %c0_64 = arith.constant 0 : index
    %c0_65 = arith.constant 0 : index
    %c0_66 = arith.constant 0 : index
    %118 = vector.load %arg21[%c0_64, %c0_65, %c0_66] : memref<4x8x16xbf16, #tpu.memory_space<vmem>>, vector<1x8x16xbf16>
    %119 = vector.shape_cast %118 : vector<1x8x16xbf16> to vector<8x16xbf16>
    %c0_67 = arith.constant 0 : index
    %c0_68 = arith.constant 0 : index
    %120 = vector.load %arg22[%c0_67, %c0_68] : memref<8x64xbf16, #tpu.memory_space<vmem>>, vector<8x16xbf16>
    tpu.vector_store %arg22[%c0_67, %c0_68], %119 {strides = array<i32>} : memref<8x64xbf16, #tpu.memory_space<vmem>>, vector<8x16xbf16>,
    %c1_69 = arith.constant 1 : index
    %c0_70 = arith.constant 0 : index
    %c0_71 = arith.constant 0 : index
    %121 = vector.load %arg21[%c1_69, %c0_70, %c0_71] : memref<4x8x16xbf16, #tpu.memory_space<vmem>>, vector<1x8x16xbf16>
    %122 = vector.shape_cast %121 : vector<1x8x16xbf16> to vector<8x16xbf16>
    %c0_72 = arith.constant 0 : index
    %c16 = arith.constant 16 : index
    %123 = vector.load %arg22[%c0_72, %c16] : memref<8x64xbf16, #tpu.memory_space<vmem>>, vector<8x16xbf16>
    tpu.vector_store %arg22[%c0_72, %c16], %122 {strides = array<i32>} : memref<8x64xbf16, #tpu.memory_space<vmem>>, vector<8x16xbf16>,
    %c2_73 = arith.constant 2 : index
    %c0_74 = arith.constant 0 : index
    %c0_75 = arith.constant 0 : index
    %124 = vector.load %arg21[%c2_73, %c0_74, %c0_75] : memref<4x8x16xbf16, #tpu.memory_space<vmem>>, vector<1x8x16xbf16>
    %125 = vector.shape_cast %124 : vector<1x8x16xbf16> to vector<8x16xbf16>
    %c0_76 = arith.constant 0 : index
    %c32 = arith.constant 32 : index
    %126 = vector.load %arg22[%c0_76, %c32] : memref<8x64xbf16, #tpu.memory_space<vmem>>, vector<8x16xbf16>
    tpu.vector_store %arg22[%c0_76, %c32], %125 {strides = array<i32>} : memref<8x64xbf16, #tpu.memory_space<vmem>>, vector<8x16xbf16>,
    %c3_77 = arith.constant 3 : index
    %c0_78 = arith.constant 0 : index
    %c0_79 = arith.constant 0 : index
    %127 = vector.load %arg21[%c3_77, %c0_78, %c0_79] : memref<4x8x16xbf16, #tpu.memory_space<vmem>>, vector<1x8x16xbf16>
    %128 = vector.shape_cast %127 : vector<1x8x16xbf16> to vector<8x16xbf16>
    %c0_80 = arith.constant 0 : index
    %c48 = arith.constant 48 : index
    %129 = vector.load %arg22[%c0_80, %c48] : memref<8x64xbf16, #tpu.memory_space<vmem>>, vector<8x16xbf16>
    tpu.vector_store %arg22[%c0_80, %c48], %128 {strides = array<i32>} : memref<8x64xbf16, #tpu.memory_space<vmem>>, vector<8x16xbf16>,
    %c0_81 = arith.constant 0 : index
    %c0_82 = arith.constant 0 : index
    %130 = vector.load %arg22[%c0_81, %c0_82] : memref<8x64xbf16, #tpu.memory_space<vmem>>, vector<8x64xbf16>
    %c0_83 = arith.constant 0 : index
    %c0_84 = arith.constant 0 : index
    %131 = vector.load %arg9[%c0_83, %c0_84] : memref<64x64xbf16, #tpu.memory_space<vmem>>, vector<64x64xbf16>
    %cst_85 = arith.constant dense<0.000000e+00> : vector<8x64xf32>
    %132 = tpu.matmul %130, %131, %cst_85 {dimension_numbers = #tpu.dot_dimension_numbers<[1], [0], [0], [1], [0, 0, 1, 1], [], []>} : vector<8x64xbf16>, vector<64x64xbf16>, vector<8x64xf32> -> vector<8x64xf32>
    %c0_86 = arith.constant 0 : index
    %c0_87 = arith.constant 0 : index
    %133 = vector.load %arg10[%c0_86, %c0_87] : memref<1x64xf32, #tpu.memory_space<vmem>>, vector<1x64xf32>
    %134 = vector.broadcast %133 : vector<1x64xf32> to vector<8x64xf32>
    %135 = arith.addf %132, %134 : vector<8x64xf32>
    %136 = vector.broadcast %4 : vector<1x64xf32> to vector<8x64xf32>
    %137 = arith.mulf %136, %135 : vector<8x64xf32>
    %138 = arith.addf %1, %137 : vector<8x64xf32>
    %c0_88 = arith.constant 0 : index
    %c0_89 = arith.constant 0 : index
    %139 = vector.load %arg11[%c0_88, %c0_89] : memref<1x64xf32, #tpu.memory_space<vmem>>, vector<1x64xf32>
    %c0_90 = arith.constant 0 : index
    %c0_91 = arith.constant 0 : index
    %140 = vector.load %arg12[%c0_90, %c0_91] : memref<1x64xf32, #tpu.memory_space<vmem>>, vector<1x64xf32>
    %cst_92 = arith.constant dense<0.000000e+00> : vector<8xf32>
    %141 = vector.multi_reduction <add>, %138, %cst_92 [1] : vector<8x64xf32> to vector<8xf32>
    %142 = vector.shape_cast %141 : vector<8xf32> to vector<8x1xf32>
    %cst_93 = arith.constant 6.400000e+01 : f32
    %143 = vector.broadcast %cst_93 : f32 to vector<8x1xf32>
    %144 = arith.divf %142, %143 : vector<8x1xf32>
    %145 = vector.broadcast %144 : vector<8x1xf32> to vector<8x64xf32>
    %146 = arith.subf %138, %145 : vector<8x64xf32>
    %147 = arith.mulf %146, %146 : vector<8x64xf32>
    %cst_94 = arith.constant dense<0.000000e+00> : vector<8xf32>
    %148 = vector.multi_reduction <add>, %147, %cst_94 [1] : vector<8x64xf32> to vector<8xf32>
    %149 = vector.shape_cast %148 : vector<8xf32> to vector<8x1xf32>
    %cst_95 = arith.constant 6.400000e+01 : f32
    %150 = vector.broadcast %cst_95 : f32 to vector<8x1xf32>
    %151 = arith.divf %149, %150 : vector<8x1xf32>
    %152 = vector.broadcast %144 : vector<8x1xf32> to vector<8x64xf32>
    %153 = arith.subf %138, %152 : vector<8x64xf32>
    %cst_96 = arith.constant 9.99999997E-7 : f32
    %154 = vector.broadcast %cst_96 : f32 to vector<8x1xf32>
    %155 = arith.addf %151, %154 : vector<8x1xf32>
    %156 = math.rsqrt %155 : vector<8x1xf32>
    %157 = vector.broadcast %156 : vector<8x1xf32> to vector<8x64xf32>
    %158 = arith.mulf %153, %157 : vector<8x64xf32>
    %159 = vector.broadcast %139 : vector<1x64xf32> to vector<8x64xf32>
    %160 = arith.mulf %158, %159 : vector<8x64xf32>
    %161 = vector.broadcast %140 : vector<1x64xf32> to vector<8x64xf32>
    %162 = arith.addf %160, %161 : vector<8x64xf32>
    %163 = arith.truncf %162 : vector<8x64xf32> to vector<8x64xbf16>
    %c0_97 = arith.constant 0 : index
    %c0_98 = arith.constant 0 : index
    %164 = vector.load %arg13[%c0_97, %c0_98] : memref<64x256xbf16, #tpu.memory_space<vmem>>, vector<64x256xbf16>
    %cst_99 = arith.constant dense<0.000000e+00> : vector<8x256xf32>
    %165 = tpu.matmul %163, %164, %cst_99 {dimension_numbers = #tpu.dot_dimension_numbers<[1], [0], [0], [1], [0, 0, 1, 1], [], []>} : vector<8x64xbf16>, vector<64x256xbf16>, vector<8x256xf32> -> vector<8x256xf32>
    %c0_100 = arith.constant 0 : index
    %c0_101 = arith.constant 0 : index
    %166 = vector.load %arg14[%c0_100, %c0_101] : memref<1x256xf32, #tpu.memory_space<vmem>>, vector<1x256xf32>
    %167 = vector.broadcast %166 : vector<1x256xf32> to vector<8x256xf32>
    %168 = arith.addf %165, %167 : vector<8x256xf32>
    %169 = arith.negf %168 : vector<8x256xf32>
    %170 = math.exp %169 : vector<8x256xf32>
    %cst_102 = arith.constant 1.000000e+00 : f32
    %171 = vector.broadcast %cst_102 : f32 to vector<8x256xf32>
    %172 = arith.addf %171, %170 : vector<8x256xf32>
    %173 = arith.divf %171, %172 : vector<8x256xf32>
    %174 = arith.mulf %168, %173 : vector<8x256xf32>
    %175 = arith.truncf %174 : vector<8x256xf32> to vector<8x256xbf16>
    %c0_103 = arith.constant 0 : index
    %c0_104 = arith.constant 0 : index
    %176 = vector.load %arg15[%c0_103, %c0_104] : memref<256x64xbf16, #tpu.memory_space<vmem>>, vector<256x64xbf16>
    %cst_105 = arith.constant dense<0.000000e+00> : vector<8x64xf32>
    %177 = tpu.matmul %175, %176, %cst_105 {dimension_numbers = #tpu.dot_dimension_numbers<[1], [0], [0], [1], [0, 0, 1, 1], [], []>} : vector<8x256xbf16>, vector<256x64xbf16>, vector<8x64xf32> -> vector<8x64xf32>
    %c0_106 = arith.constant 0 : index
    %c0_107 = arith.constant 0 : index
    %178 = vector.load %arg16[%c0_106, %c0_107] : memref<1x64xf32, #tpu.memory_space<vmem>>, vector<1x64xf32>
    %179 = vector.broadcast %178 : vector<1x64xf32> to vector<8x64xf32>
    %180 = arith.addf %177, %179 : vector<8x64xf32>
    %181 = vector.broadcast %5 : vector<1x64xf32> to vector<8x64xf32>
    %182 = arith.mulf %181, %180 : vector<8x64xf32>
    %183 = arith.addf %138, %182 : vector<8x64xf32>
    %c0_108 = arith.constant 0 : index
    %c0_109 = arith.constant 0 : index
    %c0_110 = arith.constant 0 : index
    %184 = vector.load %arg17[%c0_108, %c0_109, %c0_110] : memref<1x8x64xf32, #tpu.memory_space<vmem>>, vector<1x8x64xf32>
    %185 = vector.shape_cast %184 : vector<1x8x64xf32> to vector<8x64xf32>
    %186 = vector.shape_cast %183 : vector<8x64xf32> to vector<1x8x64xf32>
    tpu.vector_store %arg17[%c0_108, %c0_109, %c0_110], %186 {strides = array<i32>} : memref<1x8x64xf32, #tpu.memory_space<vmem>>, vector<1x8x64xf32>,
    return
  }
  func.func @transform_0(%arg0: i32) -> (i32, i32, i32) {
    %c0_i32 = arith.constant 0 : i32
    %c0_i32_0 = arith.constant 0 : i32
    %c0_i32_1 = arith.constant 0 : i32
    return %arg0, %c0_i32, %c0_i32_0 : i32, i32, i32
  }
  func.func @transform_1(%arg0: i32) -> (i32, i32, i32) {
    %c0_i32 = arith.constant 0 : i32
    %c0_i32_0 = arith.constant 0 : i32
    %c0_i32_1 = arith.constant 0 : i32
    return %arg0, %c0_i32, %c0_i32_0 : i32, i32, i32
  }
  func.func @transform_2(%arg0: i32) -> (i32, i32, i32) {
    %c0_i32 = arith.constant 0 : i32
    %c0_i32_0 = arith.constant 0 : i32
    %c0_i32_1 = arith.constant 0 : i32
    return %arg0, %c0_i32, %c0_i32_0 : i32, i32, i32
  }
  func.func @transform_3(%arg0: i32) -> (i32, i32, i32) {
    %c0_i32 = arith.constant 0 : i32
    %c0_i32_0 = arith.constant 0 : i32
    %c0_i32_1 = arith.constant 0 : i32
    return %arg0, %c0_i32, %c0_i32_0 : i32, i32, i32
  }
  func.func @transform_4(%arg0: i32) -> (i32, i32) {
    %c0_i32 = arith.constant 0 : i32
    %c0_i32_0 = arith.constant 0 : i32
    %c0_i32_1 = arith.constant 0 : i32
    return %c0_i32, %c0_i32_0 : i32, i32
  }
  func.func @transform_5(%arg0: i32) -> (i32, i32) {
    %c0_i32 = arith.constant 0 : i32
    %c0_i32_0 = arith.constant 0 : i32
    %c0_i32_1 = arith.constant 0 : i32
    return %c0_i32, %c0_i32_0 : i32, i32
  }
  func.func @transform_6(%arg0: i32) -> (i32, i32) {
    %c0_i32 = arith.constant 0 : i32
    %c0_i32_0 = arith.constant 0 : i32
    %c0_i32_1 = arith.constant 0 : i32
    return %c0_i32, %c0_i32_0 : i32, i32
  }
  func.func @transform_7(%arg0: i32) -> (i32, i32) {
    %c0_i32 = arith.constant 0 : i32
    %c0_i32_0 = arith.constant 0 : i32
    %c0_i32_1 = arith.constant 0 : i32
    return %c0_i32, %c0_i32_0 : i32, i32
  }
  func.func @transform_8(%arg0: i32) -> (i32, i32) {
    %c0_i32 = arith.constant 0 : i32
    %c0_i32_0 = arith.constant 0 : i32
    %c0_i32_1 = arith.constant 0 : i32
    return %c0_i32, %c0_i32_0 : i32, i32
  }
  func.func @transform_9(%arg0: i32) -> (i32, i32) {
    %c0_i32 = arith.constant 0 : i32
    %c0_i32_0 = arith.constant 0 : i32
    %c0_i32_1 = arith.constant 0 : i32
    return %c0_i32, %c0_i32_0 : i32, i32
  }
  func.func @transform_10(%arg0: i32) -> (i32, i32) {
    %c0_i32 = arith.constant 0 : i32
    %c0_i32_0 = arith.constant 0 : i32
    %c0_i32_1 = arith.constant 0 : i32
    return %c0_i32, %c0_i32_0 : i32, i32
  }
  func.func @transform_11(%arg0: i32) -> (i32, i32) {
    %c0_i32 = arith.constant 0 : i32
    %c0_i32_0 = arith.constant 0 : i32
    %c0_i32_1 = arith.constant 0 : i32
    return %c0_i32, %c0_i32_0 : i32, i32
  }
  func.func @transform_12(%arg0: i32) -> (i32, i32) {
    %c0_i32 = arith.constant 0 : i32
    %c0_i32_0 = arith.constant 0 : i32
    %c0_i32_1 = arith.constant 0 : i32
    return %c0_i32, %c0_i32_0 : i32, i32
  }
  func.func @transform_13(%arg0: i32) -> (i32, i32) {
    %c0_i32 = arith.constant 0 : i32
    %c0_i32_0 = arith.constant 0 : i32
    %c0_i32_1 = arith.constant 0 : i32
    return %c0_i32, %c0_i32_0 : i32, i32
  }
  func.func @transform_14(%arg0: i32) -> (i32, i32) {
    %c0_i32 = arith.constant 0 : i32
    %c0_i32_0 = arith.constant 0 : i32
    %c0_i32_1 = arith.constant 0 : i32
    return %c0_i32, %c0_i32_0 : i32, i32
  }
  func.func @transform_15(%arg0: i32) -> (i32, i32) {
    %c0_i32 = arith.constant 0 : i32
    %c0_i32_0 = arith.constant 0 : i32
    %c0_i32_1 = arith.constant 0 : i32
    return %c0_i32, %c0_i32_0 : i32, i32
  }
  func.func @transform_16(%arg0: i32) -> (i32, i32, i32) {
    %c0_i32 = arith.constant 0 : i32
    %c0_i32_0 = arith.constant 0 : i32
    %c0_i32_1 = arith.constant 0 : i32
    return %arg0, %c0_i32, %c0_i32_0 : i32, i32, i32
  }
}

</mosaic_0001>

<bundles_post_ra>
// kernel: individual_token_refiner.2
= control target key start
LH: loop header
LB: loop body
LE: loop exit
PB: predicated region body
PF: predicated region fallthrough
CT: control target
= control target key end

     0   :  { %s1790_s21 = smov 0   ;;  %s2048_s0 = inlined_call_operand.vmem [shape: f32[2,8,64], index: 0, kind: input, shape index: {}, may-alias: {0,16}]   ;;  %s2049_s1 = inlined_call_operand.vmem [shape: f32[2,1,128], index: 1, kind: input, shape index: {}]   ;;  %s2050_s2 = inlined_call_operand.vmem [shape: f32[2,1,8], index: 2, kind: input, shape index: {}]   ;;  %s2051_s3 = inlined_call_operand.vmem [shape: f32[2,8,1], index: 3, kind: input, shape index: {}]   ;;  %s2052_s4 = inlined_call_operand.vmem [shape: f32[1,64], index: 4, kind: input, shape index: {}]   ;;  %s2053_s5 = inlined_call_operand.vmem [shape: f32[1,64], index: 5, kind: input, shape index: {}]   ;;  %s2054_s6 = inlined_call_operand.vmem [shape: bf16[64,192], index: 6, kind: input, shape index: {}]   ;;  %s2055_s7 = inlined_call_operand.vmem [shape: f32[1,192], index: 7, kind: input, shape index: {}]   ;;  %s2056_s8 = inlined_call_operand.vmem [shape: bf16[64,64], index: 8, kind: input, shape index: {}]   ;;  %s2057_s9 = inlined_call_operand.vmem [shape: f32[1,64], index: 9, kind: input, shape index: {}]   ;;  %s2058_s10 = inlined_call_operand.vmem [shape: f32[1,64], index: 10, kind: input, shape index: {}]   ;;  %s2059_s11 = inlined_call_operand.vmem [shape: f32[1,64], index: 11, kind: input, shape index: {}]   ;;  %s2060_s12 = inlined_call_operand.vmem [shape: bf16[64,256], index: 12, kind: input, shape index: {}]   ;;  %s2061_s13 = inlined_call_operand.vmem [shape: f32[1,256], index: 13, kind: input, shape index: {}]   ;;  %s2062_s14 = inlined_call_operand.vmem [shape: bf16[256,64], index: 14, kind: input, shape index: {}]   ;;  %s2063_s15 = inlined_call_operand.vmem [shape: f32[1,64], index: 15, kind: input, shape index: {}]   ;;  %s2064_s16 = inlined_call_operand.vmem [shape: f32[2,8,64], index: 16, kind: output, shape index: {}, may-alias: {0,16}]  }
   0x1   :  { %2065 = sst [smem:[#allocation7_spill]] %s2048_s0 }
   0x2 LB: > { %s1461_s22 = sadd.s32 4294967295, %s1687_s21   ;;  %p1465_p0 = scmp.ge.s32.totalorder %s1687_s21, 1  ;;  %s1687_s21 = sphi %s1790_s21, %s26_s21  }
   0x3   : > { %p486_p1 = scmp.lt.s32.totalorder %s1687_s21, 3 }
   0x5   : > { %p487_p2 = pnand %p1465_p0, %p486_p1 }
   0x6   : > { %p544_p3 = scmp.lt.s32.totalorder (!%p487_p2), %s1461_s22, 1  ;;  %s2066_s29 = sld [smem:[#allocation7_spill]] (!%p487_p2) }
   0x7   : > { %490 = sbr.rel (%p487_p2) target bundleno = 2541 (0x9ed), region = 84  ;;  %s1695_s28 = smov (!%p487_p2), 112  }
   0x8   : > { %s1698_s0 = smov (!%p487_p2), 32   ;;  %s1699_s17 = smov (!%p487_p2), 96  }
   0x9   : > { %s1700_s19 = smov (!%p487_p2), 80   ;;  %s1896_s20 = smov (!%p487_p2), 0  }
   0xc   : > { %s2070_s22 = smov (!%p544_p3, %s1461_s22), 1  ;;  %vm586_vm0 = vcmask 523264   ;;  %v1617_v8 = vld [vmem:[%s2054_s6 + $0x34] ss:$8 sps:$4 sm:$0xff]   ;;  %v1619_v9 = vld [vmem:[%s2054_s6 + $0x30] ss:$8 sps:$4 sm:$0xff]   ;;  %v567_v28 = vlaneseq }
   0xd   : > { %s1801_s23 = sshll.u32 %s2070_s22, 3  ;;  %s550_s26 = scalar_lea.vmem %s2049_s1, %s2070_s22  ;;  %v1620_v10 = vld [vmem:[%s2054_s6 + $0x24] ss:$8 sps:$4 sm:$0xff]   ;;  %687 = vmatprep.subr.bf16.mxu0 %v1617_v8  ;;  %v1622_v11 = vld [vmem:[%s2054_s6 + $0x20] ss:$8 sps:$4 sm:$0xff]   ;;  %v1693_v12 = vmov 0  }
   0xe   : > { %s547_s30 = scalar_lea.vmem %s2066_s29, %s1801_s23  ;;  %s561_s18 = scalar_lea.vmem %s2064_s16, %s1801_s23  ;;  %v1815_v0 = vld [vmem:[%s550_s26] ss:$0 sm:$0xff]  ;;  %688 = vmatpush1.bf16.msra.mxu0 %v1619_v9  ;;  %711 = vmatprep.mubr.bf16.mxu0 %v1693_v12  ;;  %v1623_v13 = vld [vmem:[%s2054_s6 + $0x14] ss:$8 sps:$4 sm:$0xff]   ;;  %v1625_v14 = vld [vmem:[%s2054_s6 + $0x10] ss:$8 sps:$4 sm:$0xff]  }
   0xf   : > { %v1817_v1 = vld [vmem:[%s547_s30] sm:$0xff]  ;;  %689 = vmatprep.subr.bf16.mxu0 %v1620_v10  ;;  %1615 = vset.pattern.permute.xlu1 %v1693_v12  ;;  %s557_s29 = scalar_lea.vmem %s2051_s3, %s1801_s23  ;;  %s553_s25 = scalar_lea.vmem %s2050_s2, %s2070_s22  ;;  %v568_v29 = vand.u32 127, %v567_v28  ;;  %v1869_v34 = vshrl.u32 %v567_v28, 7  ;;  %vm722_vm4 = vcmask 125952  }
  0x10   : > { %v587_v2 = vsel %vm586_vm0, %v1817_v1, 0.0  ;;  %1616 = vset.pattern.permute.xlu0 %v1693_v12  ;;  %v1626_v15 = vld [vmem:[%s2054_s6 + $0x4] ss:$8 sps:$4 sm:$0xff]   ;;  %v1628_v16 = vld [vmem:[%s2054_s6] ss:$8 sps:$4 sm:$0xff]   ;;  %s1694_s22 = smov 64  }
  0x11   : > { %588 = vadd.xlane.f32.xlu0 %v587_v2  ;;  %v566_v17 = vld [vmem:[%s557_s29] sm:$0xff]  ;;  %vm569_vm1 = vcmp.eq.s32.totalorder %v568_v29, 0  ;;  %v628_v35 = vsub.s32 0, %v1869_v34  ;;  %v632_v37 = vsub.s32 1, %v1869_v34  ;;  %s1696_s29 = smov 48   ;;  %s1697_s30 = smov 16  }
  0x12   : > { %690 = vmatpush1.bf16.msra.mxu0 %v1622_v11  ;;  %572 = vperm.xlu1 %1615, %v566_v17   ;;  %v1470_v22 = vld [vmem:[%s2052_s4] ss:$0 sm:$0xff] }
  0x13   : > { %691 = vmatprep.subr.bf16.mxu0 %v1623_v13  ;;  %v1471_v24 = vld [vmem:[%s2053_s5] ss:$0 sm:$0xff] }
  0x14   : > { %v1469_v31 = vld [vmem:[%s553_s25] ss:$0 sm:$0xff] }
  0x15   : > { %v624_v36 = vld [vmem:[%s2055_s7] sm:$0x3] }
  0x16   : > { %692 = vmatpush1.bf16.msra.mxu0 %v1625_v14  ;;  %v629_v38 = vrot.slane %v624_v36, %v628_v35  ;;  %v633_v39 = vrot.slane %v624_v36, %v632_v37 }
  0x17   : > { %693 = vmatprep.subr.bf16.mxu0 %v1626_v15 }
  0x1a   : > { %694 = vmatpush1.bf16.msra.mxu0 %v1628_v16 }
  0x8d   : > { %v573_v30 = vpop.permute.xlu1 %572 }
  0x8e   : > { %v581_v32 = vmul.f32 %v1469_v31, %v573_v30 }
  0x90   : > { %vm582_vm2 = vcmp.gt.f32.partialorder %v581_v32, 0.5 }
  0x91   : > { %vm1865_vm3 = vmor %vm582_vm2, %vm569_vm1 }
  0x9a   : > { %v589_v3 = vpop.xlane.xlu0 %588 }
  0x9b   : > { %v591_v4 = vmul.f32 0.015625, %v589_v3 }
  0x9d   : > { %v592_v5 = vsub.f32 %v1817_v1, %v591_v4 }
  0x9f   : > { %v593_v6 = vmul.f32 %v592_v5, %v592_v5 }
  0xa1   : > { %v594_v7 = vsel %vm586_vm0, %v593_v6, 0.0 }
  0xa2   : > { %595 = vadd.xlane.f32.xlu0 %v594_v7 }
 0x12b   : > { %v596_v18 = vpop.xlane.xlu0 %595 }
 0x12c   : > { %v597_v19 = vmul.f32 0.015625, %v596_v18 }
 0x12e   : > { %v598_v20 = vadd.f32 1e-06, %v597_v19 }
 0x130   : > { %1629 = vrsqrt.f32 %v598_v20 }
 0x13d   : > { %v1630_v21 = vpop.eup %1629 }
 0x13e   : > { %v600_v23 = vmul.f32 %v1630_v21, %v592_v5 }
 0x140   : > { %v607_v25 = vmul.f32 %v1470_v22, %v600_v23 }
 0x142   : > { %v614_v26 = vadd.f32 %v1471_v24, %v607_v25 }
 0x144   : > { %v615_v27 = vpack.c.bf16 %v614_v26, %v614_v26 }
 0x146   : > { %1480 = vmatmul.mubr.msk.bf16.vlgmr.msra.gmra.mxu0 %vm586_vm0, %v615_v27 }
 0x206   : > { %v713_v40 = vpop.f32.mrf.mxu0 }
 0x207   : > { %v714_v41 = vadd.f32 %v713_v40, %v629_v38 }
 0x208   : > { %v715_v42 = vpop.f32.mrf.mxu0 }
 0x209   : > { %v720_v43 = vmul.f32 0.25, %v714_v41  ;;  %v1529_v44 = vpack.c.bf16 %v714_v41, %v714_v41  ;;  %v716_v45 = vadd.f32 %v715_v42, %v633_v39 }
 0x20a   : > { %v717_v46 = vpop.f32.mrf.mxu0 }
 0x20b   : > { %v721_v47 = vpack.c.bf16 %v720_v43, %v720_v43  ;;  %v732_v48 = vpack.c.bf16 %v716_v45, %v716_v45  ;;  %728 = vrot.lane.b32.xlu1 %v1529_v44, %s1694_s22 }
 0x20c   : > { %v718_v49 = vpop.f32.mrf.mxu0 }
 0x20d   : > { %723 = vst.msk [vmem:[#allocation2] sm:$0xf] %vm722_vm4, %v721_v47  ;;  %733 = vst.msk [vmem:[#allocation4] sm:$0xf] %vm722_vm4, %v732_v48  ;;  %737 = vrot.lane.b32.xlu0 %v721_v47, %s1695_s28 }
 0x20f   : > { %742 = vrot.lane.b32.xlu1 %v1529_v44, %s1696_s29 }
 0x211   : > { %775 = vrot.lane.b32.xlu0 %v1529_v44, %s1697_s30 }
 0x213   : > { %760 = vrot.lane.b32.xlu1 %v1529_v44, %s1698_s0 }
 0x217   : > { %750 = vrot.lane.b32.xlu1 %v732_v48, %s1695_s28 }
 0x21b   : > { %755 = vrot.lane.b32.xlu1 %v721_v47, %s1699_s17 }
 0x21f   : > { %765 = vrot.lane.b32.xlu1 %v732_v48, %s1699_s17 }
 0x223   : > { %770 = vrot.lane.b32.xlu1 %v721_v47, %s1700_s19 }
 0x227   : > { %780 = vrot.lane.b32.xlu1 %v732_v48, %s1700_s19 }
 0x27d   : > { %v729_v50 = vpop.permute.xlu1 %728 }
 0x27e   : > { %731 = vst.msk [vmem:[#allocation3] sm:$0xf] %vm722_vm4, %v729_v50 }
 0x27f   : > { %v738_v51 = vpop.permute.xlu0 %737 }
 0x280   : > { %741 = vst.msk [vmem:[#allocation2 + $0x4] sm:$0xf] %vm722_vm4, %v738_v51 }
 0x281   : > { %v743_v52 = vpop.permute.xlu1 %742 }
 0x282   : > { %746 = vst.msk [vmem:[#allocation3 + $0x4] sm:$0xf] %vm722_vm4, %v743_v52 }
 0x283   : > { %v776_v53 = vpop.permute.xlu0 %775 }
 0x284   : > { %779 = vst.msk [vmem:[#allocation3 + $0xc] sm:$0xf] %vm722_vm4, %v776_v53 }
 0x285   : > { %v761_v54 = vpop.permute.xlu1 %760 }
 0x286   : > { %764 = vst.msk [vmem:[#allocation3 + $0x8] sm:$0xf] %vm722_vm4, %v761_v54 }
 0x289   : > { %v751_v55 = vpop.permute.xlu1 %750 }
 0x28a   : > { %754 = vst.msk [vmem:[#allocation4 + $0x4] sm:$0xf] %vm722_vm4, %v751_v55 }
 0x28d   : > { %v756_v56 = vpop.permute.xlu1 %755 }
 0x28e   : > { %759 = vst.msk [vmem:[#allocation2 + $0x8] sm:$0xf] %vm722_vm4, %v756_v56 }
 0x291   : > { %v766_v57 = vpop.permute.xlu1 %765 }
 0x292   : > { %769 = vst.msk [vmem:[#allocation4 + $0x8] sm:$0xf] %vm722_vm4, %v766_v57 }
 0x295   : > { %v771_v58 = vpop.permute.xlu1 %770 }
 0x296   : > { %774 = vst.msk [vmem:[#allocation2 + $0xc] sm:$0xf] %vm722_vm4, %v771_v58 }
 0x299   : > { %v781_v59 = vpop.permute.xlu1 %780 }
 0x29a   : > { %784 = vst.msk [vmem:[#allocation4 + $0xc] sm:$0xf] %vm722_vm4, %v781_v59 }
 0x29b LB: >> { %v1701_v60 = vmov 0.0   ;;  %vm1702_vm5 = vmmov 0   ;;  %s1902_s24 = sshll.u32 %s1691_s20, 2  ;;  %vm800_vm6 = vcmask 130048   ;;  %vm848_vm7 = vcmask 64512   ;;  %s790_s20 = sadd.s32 1, %s1691_s20   ;;  %s1691_s20 = sphi %s1896_s20, %s790_s20  }
 0x29c   : >> { %1563 = vmatprep.subr.bf16.mxu0 %v1701_v60  ;;  %1565 = vmatprep.mubr.msk.bf16.mxu0 %vm1702_vm5, %v1701_v60  ;;  %s795_s25 = scalar_lea.vmem [#allocation3], %s1902_s24  ;;  %s792_s26 = scalar_lea.vmem [#allocation2], %s1902_s24  ;;  %vm862_vm8 = vcmask 1043456  }
 0x29d   : >> { %1569 = vmatprep.subr.bf16.mxu1 %v1701_v60  ;;  %1571 = vmatprep.mubr.msk.bf16.mxu1 %vm1702_vm5, %v1701_v60  ;;  %v796_v61 = vld [vmem:[%s795_s25] sm:$0xf]  ;;  %s798_s27 = scalar_lea.vmem [#allocation4], %s1902_s24  ;;  %s910_s28 = scalar_lea.vmem [#allocation5], %s1902_s24 }
 0x29e   : >> { %v805_v62 = vsel %vm800_vm6, %v796_v61, 0  ;;  %v793_v63 = vld [vmem:[%s792_s26] sm:$0xf]  ;;  %p787_p4 = scmp.ge.s32.totalorder %s790_s20, 4  }
 0x29f   : >> { %1564 = vmatpush3.bf16.xpose.msra.mxu0 %v805_v62  ;;  %v1703_v28 = vmov (%p787_p4), 0.0   ;;  %v1635_v29 = vld [vmem:[%s2056_s8 + $0x18] sm:$0xff] (%p787_p4)   ;;  %v1636_v31 = vld [vmem:[%s2056_s8 + $0x10] sm:$0xff] (%p787_p4)   ;;  %v1637_v32 = vld [vmem:[%s2056_s8 + $0x8] sm:$0xff] (%p787_p4)   ;;  %vm1704_vm9 = vmmov (%p787_p4), 0   ;;  %vm920_vm10 = vcmask (%p787_p4), 257152  }
 0x2a0   : > { %v1638_v33 = vld [vmem:[%s2056_s8] sm:$0xff] (%p787_p4)   ;;  %vm928_vm11 = vcmask (%p787_p4), 388352   ;;  %vm936_vm12 = vcmask (%p787_p4), 519552   ;;  %v1639_v54 = vld [vmem:[%s2060_s12 + $0x30] ss:$8 sps:$4 sm:$0xff] (%p787_p4)  }
 0x2a1   : >> { %v799_v8 = vld [vmem:[%s798_s27] sm:$0xf]  ;;  %v1644_v55 = vld [vmem:[%s2060_s12 + $0x24] ss:$8 sps:$4 sm:$0xff] (%p787_p4)   ;;  %v1647_v57 = vld [vmem:[%s2060_s12 + $0x14] ss:$8 sps:$4 sm:$0xff] (%p787_p4)  }
 0x2a2   : >> { %v864_v9 = vsel %vm862_vm8, %v799_v8, 0  ;;  %v1490_v41 = vld [vmem:[%s2057_s9] ss:$0 sm:$0xff] (%p787_p4)  ;;  %v1645_v58 = vld [vmem:[%s2060_s12 + $0x10] ss:$8 sps:$4 sm:$0xff] (%p787_p4)  }
 0x2a3   : >> { %1570 = vmatpush3.bf16.msra.mxu1 %v864_v9  ;;  %v1642_v56 = vld [vmem:[%s2060_s12 + $0x20] ss:$8 sps:$4 sm:$0xff] (%p787_p4)   ;;  %v1650_v59 = vld [vmem:[%s2060_s12 + $0x4] ss:$8 sps:$4 sm:$0xff] (%p787_p4)   ;;  %v1651_v9 = vld [vmem:[%s2062_s14 + $0x78] sm:$0xff] (%p787_p4)  }
 0x2a4   : > { %1575 = vmatprep.subr.bf16.mxu1 (%p787_p4), %v1703_v28  ;;  %v1648_v60 = vld [vmem:[%s2060_s12] ss:$8 sps:$4 sm:$0xff] (%p787_p4)   ;;  %1541 = vmatprep.subr.bf16.mxu0 (%p787_p4), %v1651_v9 }
 0x2a6   : >> { %1566 = vmatmul.mubr.msk.bf16.vlgmr.msra.gmra.mxu0 %vm800_vm6, %v793_v63 }
 0x366   : >> { %v841_v2 = vpop.f32.mrf.mxu0 }
 0x367   : >> { %v847_v3 = vsel %vm1865_vm3, %v841_v2, -1e+09 }
 0x368   : >> { %v1567_v4 = vpop.f32.mrf.mxu0  ;;  %v849_v5 = vsel %vm848_vm7, %v847_v3, -inf }
 0x369   : >> { %850 = vmax.xlane.f32.xlu0 %v849_v5  ;;  %v1498_v5 = vld [vmem:[%s2059_s11] ss:$0 sm:$0xff] (%p787_p4) }
 0x36a   : >> { %v844_v6 = vpop.f32.mrf.mxu0 }
 0x36c   : >> { %v1568_v7 = vpop.f32.mrf.mxu0 }
 0x3f2   : >> { %v851_v10 = vpop.xlane.xlu0 %850 }
 0x3f3   : >> { %v852_v11 = vsub.f32 %v847_v3, %v851_v10  ;;  %v1497_v3 = vld [vmem:[%s2058_s10] ss:$0 sm:$0xff] (%p787_p4)  ;;  %v1652_v10 = vld [vmem:[%s2062_s14 + $0x38] sm:$0xff] (%p787_p4)  }
 0x3f4   : > { %1542 = vmatpush3.bf16.msra.mxu0 (%p787_p4), %v1652_v10 }
 0x3f5   : >> { %v853_v13 = vmul.f32 1.442695, %v852_v11  ;;  %v1653_v11 = vld [vmem:[%s2062_s14 + $0x70] sm:$0xff] (%p787_p4)  }
 0x3f6   : > { %1543 = vmatprep.subr.bf16.mxu0 (%p787_p4), %v1653_v11 }
 0x3f7   : >> { %1631 = vpow2.f32 %v853_v13  ;;  %v1654_v13 = vld [vmem:[%s2062_s14 + $0x30] sm:$0xff] (%p787_p4)  }
 0x3f8   : > { %1544 = vmatpush3.bf16.msra.mxu0 (%p787_p4), %v1654_v13 }
 0x404   : >> { %v1632_v14 = vpop.eup %1631 }
 0x405   : >> { %v855_v15 = vsel %vm848_vm7, %v1632_v14, 0.0  ;;  %v858_v16 = vpack.c.bf16 %v1632_v14, %v1632_v14  ;;  %v1655_v14 = vld [vmem:[%s2062_s14 + $0x68] sm:$0xff] (%p787_p4)  }
 0x406   : >> { %856 = vadd.xlane.f32.xlu0 %v855_v15  ;;  %v1656_v15 = vld [vmem:[%s2062_s14 + $0x28] sm:$0xff] (%p787_p4)   ;;  %1545 = vmatprep.subr.bf16.mxu0 (%p787_p4), %v1655_v14 }
 0x407   : >> { %1572 = vmatmul.mubr.msk.bf16.vlgmr.msra.gmra.mxu1 %vm848_vm7, %v858_v16  ;;  %1546 = vmatpush3.bf16.msra.mxu0 (%p787_p4), %v1656_v15  ;;  %v1657_v16 = vld [vmem:[%s2062_s14 + $0x60] sm:$0xff] (%p787_p4)  }
 0x408   : > { %1576 = vmatpush3.bf16.msra.mxu1 (%p787_p4), %v1635_v29  ;;  %1583 = vmatprep.mubr.msk.bf16.mxu1 (%p787_p4), %vm1704_vm9, %v1703_v28 }
 0x409   : > { %1577 = vmatprep.subr.bf16.mxu1 (%p787_p4), %v1703_v28  ;;  %1547 = vmatprep.subr.bf16.mxu0 (%p787_p4), %v1657_v16 }
 0x40c   : > { %1578 = vmatpush3.bf16.msra.mxu1 (%p787_p4), %v1636_v31 }
 0x40d   : > { %1579 = vmatprep.subr.bf16.mxu1 (%p787_p4), %v1703_v28 }
 0x410   : > { %1580 = vmatpush3.bf16.msra.mxu1 (%p787_p4), %v1637_v32 }
 0x411   : > { %1581 = vmatprep.subr.bf16.mxu1 (%p787_p4), %v1703_v28 }
 0x414   : > { %1582 = vmatpush3.bf16.msra.mxu1 (%p787_p4), %v1638_v33 }
 0x48f   : >> { %v857_v17 = vpop.xlane.xlu0 %856 }
 0x490   : >> { %1633 = vrcp.f32 %v857_v17  ;;  %v1658_v17 = vld [vmem:[%s2062_s14 + $0x20] sm:$0xff] (%p787_p4)  }
 0x491   : > { %1548 = vmatpush3.bf16.msra.mxu0 (%p787_p4), %v1658_v17 }
 0x49d   : >> { %v1634_v18 = vpop.eup %1633 }
 0x4c7   : >> { %v900_v19 = vpop.f32.mrf.mxu1 }
 0x4c8   : >> { %v907_v20 = vmul.f32 %v1634_v18, %v900_v19  ;;  %v1659_v18 = vld [vmem:[%s2062_s14 + $0x58] sm:$0xff] (%p787_p4)  }
 0x4c9   : >> { %v1573_v21 = vpop.f32.mrf.mxu1  ;;  %789 = sbr.rel (!%p787_p4) target bundleno = 667 (0x29b), region = 146  ;;  %v1660_v19 = vld [vmem:[%s2062_s14 + $0x18] sm:$0xff] (%p787_p4)   ;;  %1549 = vmatprep.subr.bf16.mxu0 (%p787_p4), %v1659_v18 }
 0x4ca   : >> { %v908_v22 = vpack.c.bf16 %v907_v20, %v907_v20  ;;  %1550 = vmatpush3.bf16.msra.mxu0 (%p787_p4), %v1660_v19  ;;  %v1661_v20 = vld [vmem:[%s2062_s14 + $0x50] sm:$0xff] (%p787_p4)  }
 0x4cb   : >> { %v903_v23 = vpop.f32.mrf.mxu1  ;;  %v1662_v21 = vld [vmem:[%s2062_s14 + $0x10] sm:$0xff] (%p787_p4)   ;;  %1551 = vmatprep.subr.bf16.mxu0 (%p787_p4), %v1661_v20 }
 0x4cc   : >> { %911 = vst.msk [vmem:[%s910_s28] sm:$0xf] %vm722_vm4, %v908_v22  ;;  %v1663_v22 = vld [vmem:[%s2062_s14 + $0x48] sm:$0xff] (%p787_p4)  }
 0x4cd   : >> { %v1574_v24 = vpop.f32.mrf.mxu1  ;;  %v1664_v23 = vld [vmem:[%s2062_s14 + $0x8] sm:$0xff] (%p787_p4)  }
 0x4ce   : > { %1552 = vmatpush3.bf16.msra.mxu0 %v1662_v21  ;;  %v1665_v24 = vld [vmem:[%s2062_s14 + $0x40] sm:$0xff]  }
 0x4cf   : > { %1553 = vmatprep.subr.bf16.mxu0 %v1663_v22 }
 0x4d2   : > { %1554 = vmatpush3.bf16.msra.mxu0 %v1664_v23 }
 0x4d3   : > { %v915_v25 = vld [vmem:[#allocation5 + $0x4] sm:$0xf]  ;;  %v923_v26 = vld [vmem:[#allocation5 + $0x8] sm:$0xf]  ;;  %v931_v27 = vld [vmem:[#allocation5 + $0xc] sm:$0xf]  ;;  %1555 = vmatprep.subr.bf16.mxu0 %v1665_v24 }
 0x4d4   : > { %917 = vrot.lane.b32.xlu0 %v915_v25, %s1697_s30  ;;  %933 = vrot.lane.b32.xlu1 %v931_v27, %s1696_s29  ;;  %v912_v30 = vld [vmem:[#allocation5] sm:$0xf]  ;;  %v1666_v25 = vld [vmem:[%s2062_s14] sm:$0xff]  }
 0x4d5   : > { %913 = vst.msk [vmem:[#allocation6] sm:$0xf] %vm722_vm4, %v912_v30 }
 0x4d6   : > { %1556 = vmatpush3.bf16.msra.mxu0 %v1666_v25 }
 0x4d8   : > { %925 = vrot.lane.b32.xlu0 %v923_v26, %s1698_s0  ;;  %v1067_v26 = vld [vmem:[%s2061_s13] sm:$0x3] }
 0x4d9   : > { %v1072_v27 = vrot.slane %v1067_v26, %v628_v35  ;;  %v1076_v28 = vrot.slane %v1067_v26, %v632_v37 }
 0x546   : > { %v918_v36 = vpop.permute.xlu0 %917  ;;  %v934_v38 = vpop.permute.xlu1 %933 }
 0x547   : > { %921 = vst.msk [vmem:[#allocation6] sm:$0xf] %vm920_vm10, %v918_v36 }
 0x54a   : > { %v926_v39 = vpop.permute.xlu0 %925 }
 0x54b   : > { %929 = vst.msk [vmem:[#allocation6] sm:$0xf] %vm928_vm11, %v926_v39 }
 0x54c   : > { %937 = vst.msk [vmem:[#allocation6] sm:$0xf] %vm936_vm12, %v934_v38 }
 0x553   : > { %v938_v40 = vld [vmem:[#allocation6] sm:$0xf] }
 0x554   : > { %1584 = vmatmul.mubr.msk.bf16.vlgmr.msra.gmra.mxu1 %vm586_vm0, %v938_v40 }
 0x555   : > { %1154 = vmatprep.mubr.bf16.mxu1 %v1693_v12 }
 0x614   : > { %v1015_v42 = vpop.f32.mrf.mxu1 }
 0x615   : > { %v1016_v43 = vadd.f32 %v1490_v41, %v1015_v42 }
 0x616   : > { %v1585_v44 = vpop.f32.mrf.mxu1 }
 0x617   : > { %v1027_v45 = vmul.f32 %v1815_v0, %v1016_v43 }
 0x618   : > { %v1018_v46 = vpop.f32.mrf.mxu1 }
 0x619   : > { %v1940_v47 = vadd.f32 %v1027_v45, %v1817_v1  ;;  %v1641_v1 = vld [vmem:[%s2060_s12 + $0x34] ss:$8 sps:$4 sm:$0xff]  }
 0x61a   : > { %v1586_v48 = vpop.f32.mrf.mxu1  ;;  %1130 = vmatprep.subr.bf16.mxu1 %v1641_v1 }
 0x61b   : > { %v1031_v49 = vsel %vm586_vm0, %v1940_v47, 0.0  ;;  %1131 = vmatpush1.bf16.msra.mxu1 %v1639_v54 }
 0x61c   : > { %1032 = vadd.xlane.f32.xlu1 %v1031_v49  ;;  %1132 = vmatprep.subr.bf16.mxu1 %v1644_v55 }
 0x61f   : > { %1133 = vmatpush1.bf16.msra.mxu1 %v1642_v56 }
 0x620   : > { %1134 = vmatprep.subr.bf16.mxu1 %v1647_v57 }
 0x623   : > { %1135 = vmatpush1.bf16.msra.mxu1 %v1645_v58 }
 0x624   : > { %1136 = vmatprep.subr.bf16.mxu1 %v1650_v59 }
 0x627   : > { %1137 = vmatpush1.bf16.msra.mxu1 %v1648_v60 }
 0x6a5   : > { %v1033_v50 = vpop.xlane.xlu1 %1032 }
 0x6a6   : > { %v1034_v12 = vmul.f32 0.015625, %v1033_v50  ;;  %v1510_v50 = vld [vmem:[%s2063_s15] ss:$0 sm:$0xff] }
 0x6a8   : > { %v1035_v51 = vsub.f32 %v1940_v47, %v1034_v12 }
 0x6aa   : > { %v1036_v52 = vmul.f32 %v1035_v51, %v1035_v51 }
 0x6ac   : > { %v1037_v53 = vsel %vm586_vm0, %v1036_v52, 0.0 }
 0x6ad   : > { %1038 = vadd.xlane.f32.xlu0 %v1037_v53 }
 0x736   : > { %v1039_v61 = vpop.xlane.xlu0 %1038 }
 0x737   : > { %v1040_v62 = vmul.f32 0.015625, %v1039_v61 }
 0x739   : > { %v1041_v63 = vadd.f32 1e-06, %v1040_v62 }
 0x73b   : > { %1667 = vrsqrt.f32 %v1041_v63 }
 0x748   : > { %v1668_v2 = vpop.eup %1667 }
 0x749   : > { %v1043_v4 = vmul.f32 %v1668_v2, %v1035_v51 }
 0x74b   : > { %v1050_v6 = vmul.f32 %v1497_v3, %v1043_v4 }
 0x74d   : > { %v1057_v7 = vadd.f32 %v1498_v5, %v1050_v6 }
 0x74f   : > { %v1058_v8 = vpack.c.bf16 %v1057_v7, %v1057_v7 }
 0x751   : > { %1507 = vmatmul.mubr.msk.bf16.vlgmr.msra.gmra.mxu1 %vm586_vm0, %v1058_v8 }
 0x811   : > { %v1156_v29 = vpop.f32.mrf.mxu1 }
 0x812   : > { %v1157_v30 = vadd.f32 %v1156_v29, %v1072_v27 }
 0x813   : > { %v1158_v31 = vpop.f32.mrf.mxu1 }
 0x814   : > { %v1508_v32 = vmul.f32 -1.442695, %v1157_v30  ;;  %v1159_v33 = vadd.f32 %v1158_v31, %v1076_v28 }
 0x815   : > { %v1160_v36 = vpop.f32.mrf.mxu1 }
 0x816   : > { %1669 = vpow2.f32 %v1508_v32  ;;  %v1509_v38 = vmul.f32 -1.442695, %v1159_v33 }
 0x817   : > { %v1161_v39 = vpop.f32.mrf.mxu1 }
 0x818   : > { %1671 = vpow2.f32 %v1509_v38 }
 0x823   : > { %v1670_v40 = vpop.eup %1669 }
 0x824   : > { %v1169_v41 = vadd.f32 1.0, %v1670_v40 }
 0x825   : > { %v1672_v42 = vpop.eup %1671 }
 0x826   : > { %1673 = vrcp.f32 %v1169_v41  ;;  %v1170_v43 = vadd.f32 1.0, %v1672_v42 }
 0x828   : > { %1675 = vrcp.f32 %v1170_v43 }
 0x833   : > { %v1674_v35 = vpop.eup %1673 }
 0x834   : > { %v1175_v34 = vmul.f32 %v1674_v35, %v1157_v30 }
 0x835   : > { %v1676_v44 = vpop.eup %1675 }
 0x836   : > { %v1176_v37 = vmul.f32 %v1676_v44, %v1159_v33  ;;  %v1177_v46 = vpack.c.bf16 %v1175_v34, %v1175_v34 }
 0x838   : > { %v1178_v45 = vpack.c.bf16 %v1176_v37, %v1176_v37 }
 0x83a   : > { %1346 = vmatprep.mubr.bf16.mxu0 %v1178_v45 }
 0x83b   : > { %1347 = vmatmul.mubr.bf16.vlgmr.msra.gmra.mxu0 %v1177_v46 }
 0x8fb   : > { %v1557_v48 = vpop.f32.mrf.mxu0 }
 0x8fd   : > { %v1558_v49 = vpop.f32.mrf.mxu0 }
 0x8fe   : > { %v1559_v12 = vadd.f32 %v1558_v49, %v1557_v48 }
 0x8ff   : > { %v1560_v51 = vpop.f32.mrf.mxu0 }
 0x900   : > { %v1349_v52 = vadd.f32 %v1559_v12, %v1510_v50 }
 0x901   : > { %v1561_v53 = vpop.f32.mrf.mxu0 }
 0x902   : > { %1355 = vrot.lane.b32.xlu0 %v1349_v52, %s1694_s22 }
 0x974   : > { %v1356_v54 = vpop.permute.xlu0 %1355 }
 0x975   : > { %v1358_v1 = vmul.f32 %v1815_v0, %v1356_v54 }
 0x977   : > { %1360 = vrot.lane.b32.xlu1 %v1358_v1, %s1694_s22 }
 0x9e9   : > { %v1361_v55 = vpop.permute.xlu1 %1360 }
 0x9ea   : > { %v1363_v56 = vadd.f32 %v1361_v55, %v1940_v47 }
 0x9ec   : > { %1364 = vst.msk [vmem:[%s561_s18] sm:$0xff] %vm586_vm0, %v1363_v56 }
 0x9ed PF: > { %s26_s21 = sadd.s32 1, %s1687_s21  }
 0x9ee   : > { %p23_p5 = scmp.ge.s32.totalorder %s26_s21, 4  }
 0x9f0   :  { %25 = sbr.rel (!%p23_p5) target bundleno = 2 (0x2), region = 157 }

// kernel: individual_token_refiner.3
= control target key start
LH: loop header
LB: loop body
LE: loop exit
PB: predicated region body
PF: predicated region fallthrough
CT: control target
= control target key end

     0   :  { %s2347_s0 = inlined_call_operand.hbm [shape: f32[2,8,64], index: 0, kind: input, shape index: {}, may-alias: {0,16}]   ;;  %s2348_s1 = inlined_call_operand.vmem [shape: f32[2,1,128], index: 1, kind: input, shape index: {}]   ;;  %s2349_s2 = inlined_call_operand.vmem [shape: f32[2,1,8], index: 2, kind: input, shape index: {}]   ;;  %s2350_s3 = inlined_call_operand.vmem [shape: f32[2,8,1], index: 3, kind: input, shape index: {}]   ;;  %s2351_s4 = inlined_call_operand.vmem [shape: f32[1,64], index: 4, kind: input, shape index: {}]   ;;  %s2352_s5 = inlined_call_operand.vmem [shape: f32[1,64], index: 5, kind: input, shape index: {}]   ;;  %s2353_s6 = inlined_call_operand.vmem [shape: bf16[64,192], index: 6, kind: input, shape index: {}]   ;;  %s2354_s7 = inlined_call_operand.vmem [shape: f32[1,192], index: 7, kind: input, shape index: {}]   ;;  %s2355_s8 = inlined_call_operand.vmem [shape: bf16[64,64], index: 8, kind: input, shape index: {}]   ;;  %s2356_s9 = inlined_call_operand.vmem [shape: f32[1,64], index: 9, kind: input, shape index: {}]   ;;  %s2357_s10 = inlined_call_operand.vmem [shape: f32[1,64], index: 10, kind: input, shape index: {}]   ;;  %s2358_s11 = inlined_call_operand.vmem [shape: f32[1,64], index: 11, kind: input, shape index: {}]   ;;  %s2359_s12 = inlined_call_operand.vmem [shape: bf16[64,256], index: 12, kind: input, shape index: {}]   ;;  %s2360_s13 = inlined_call_operand.vmem [shape: f32[1,256], index: 13, kind: input, shape index: {}]   ;;  %s2361_s14 = inlined_call_operand.vmem [shape: bf16[256,64], index: 14, kind: input, shape index: {}]   ;;  %s2362_s15 = inlined_call_operand.vmem [shape: f32[1,64], index: 15, kind: input, shape index: {}]   ;;  %s2363_s16 = inlined_call_operand.hbm [shape: f32[2,8,64], index: 16, kind: output, shape index: {}, may-alias: {0,16}]  }
   0x1   :  { %2375 = sst [smem:[#allocation19_spill]] %s2347_s0 }
   0x2   :  { %2376 = sst [smem:[#allocation20_spill]] %s2360_s13 }
   0x3   :  { %2377 = sst [smem:[#allocation21_spill]] %s2362_s15 }
   0x4   :  { %2378 = sst [smem:[#allocation22_spill]] %s2363_s16 }
   0x5   :  { %21 = vsyncpa [#allocation8], 0 }
   0x6   :  { %23 = vsyncpa [#allocation8 + $0x1], 0 }
   0x7   :  { %24 = vsyncpa [#allocation9], 0 }
   0x8   :  { %26 = vsyncpa [#allocation9 + $0x1], 0  ;;  %s1970_s21 = smov 0   ;;  %s1972_s22 = smov 0  }
   0x9   :  { %s1974_s23 = smov 0   ;;  %s1976_s24 = smov 0  }
   0xa LB: > { %2379 = sst [smem:[#allocation13_spill]] %s1853_s21  ;;  %s1991_s25 = sadd.s32 4294967295, %s1865_s24   ;;  %s1865_s24 = sphi %s1976_s24, %s2406_s24   ;;  %s1861_s23 = sphi %s1974_s23, %s2408_s23   ;;  %s1857_s22 = sphi %s1972_s22, %s2410_s22   ;;  %s1853_s21 = sphi %s1970_s21, %s2409_s21  }
   0xb   : > { %2380 = sst [smem:[#allocation14_spill]] %s1861_s23  ;;  %s1512_s26 = sadd.s32 4294967294, %s1865_s24  }
   0xc   : > { %s1995_s27 = sadd.s32 1, %s1865_s24   ;;  %s39_s28 = sadd.s32 1, %s1861_s23 }
   0xd   : > { %2381 = sst [smem:[#allocation15_spill]] %s1995_s27  ;;  %s36_s29 = ssub.s32 %s1865_s24, %s1995_s27 }
   0xe   : > { %p46_p0 = scmp.ne.s32.totalorder %s1861_s23, %s1857_s22  ;;  %p37_p1 = scmp.eq.s32.totalorder %s36_s29, 0 }
   0xf   : > { %p47_p2 = scmp.eq.s32.totalorder %s1865_s24, 0  ;;  %p52_p3 = scmp.ne.s32.totalorder %s1857_s22, %s1853_s21 }
  0x10   : > { %p53_p4 = scmp.eq.s32.totalorder %s1991_s25, 0  ;;  %p406_p7 = scmp.eq.s32.totalorder %s1991_s25, 1 }
  0x11   : > { %s2007_s30 = scalar_select %p37_p1, %s1861_s23, %s39_s28  }
  0x12   : > { %p2009_p5 = por %p47_p2, %p46_p0  ;;  %p2013_p6 = por %p53_p4, %p52_p3 }
  0x13   : > { %2382 = sst [smem:[#allocation16_spill]] %s2007_s30  ;;  %p412_p8 = scmp.eq.s32.totalorder %s1512_s26, 1 }
  0x14   : > { %s2384_s17 = scalar_select %p2013_p6, 1, 0 }
  0x15   : > { %p1653_p10 = scmp.lt.s32.totalorder %s1865_s24, 2  ;;  %p2020_p11 = por %p406_p7, %p46_p0 }
  0x16   : > { %p2024_p12 = por %p412_p8, %p52_p3  ;;  %s468_s20 = sand.u32 1, %s1861_s23  }
  0x17   : > { %s2385_s18 = scalar_select %p2020_p11, 1, 0 }
  0x18   : > { %s2387_s19 = scalar_select %p2024_p12, 1, 0 }
  0x19   : > { %2386 = sst [smem:[#allocation17_spill]] %s2385_s18  ;;  %s1516_s28 = sshll.u32 %s1865_s24, 7 }
  0x1a   : > { %2388 = sst [smem:[#allocation18_spill]] %s2387_s19  ;;  %s1515_s29 = sshll.u32 %s468_s20, 3 }
  0x1b   : > { %s2389_s21 = sld [smem:[#allocation19_spill]]  ;;  %s472_s26 = scalar_lea.vmem [#allocation7], %s1515_s29 }
  0x1c   : > { %s479_s13 = sshll.u32 %s472_s26, 4  ;;  %p2037_p13 = pnand %p1653_p10, %p2009_p5  ;;  %s2041_s13 = int_to_ptr.vmem [resolvable:$true] %s479_s13 }
  0x1d   : > { %s469_s23 = scalar_lea.sflag [#allocation8], %s468_s20 }
  0x1e   : > { %p1771_p3 = pneg %p2037_p13 }
  0x21   : > { %s2390_s16 = smov %s2389_s21  ;;  %s2033_s15 = scalar_lea.hbm %s2389_s21, %s1516_s28 }
  0x22   : > { %s1769_s19 = scalar_lea.hbm %s2033_s15, 128  ;;  %s1774_s30 = scalar_lea.hbm %s2390_s16, 256 }
  0x23   : > { %p1770_p2 = scmp.ne.s32.totalorder %s2033_s15, %s1769_s19  ;;  %p1775_p5 = scmp.lt.s32.totalorder %s2033_s15, %s2390_s16 }
  0x24   : > { %p1776_p8 = scmp.lt.s32.totalorder %s1774_s30, %s1769_s19 }
  0x25   : > { %p1772_p4 = pnand %p1771_p3, %p1770_p2 }
  0x26   : > { %p1777_p10 = por %p1776_p8, %p1775_p5 }
  0x27   : > { %p1773_p7 = pneg %p1772_p4 }
  0x29   : > { %p1778_p9 = pnand %p1777_p10, %p1773_p7 }
  0x2b   : > { %1781 = shalt.err (!%p1778_p9)
}
  0x2c   : > { %s1782_s20 = scalar_lea.vmem %s2041_s13, 128  ;;  %s1871_s29 = smov [#allocation7]  }
  0x2d   : > { %p1783_p0 = scmp.ne.s32.totalorder %s2041_s13, %s1782_s20  ;;  %s1787_s26 = sshll.u32 %s1871_s29, 4  ;;  %s1788_s26 = int_to_ptr.vmem [resolvable:$false] %s1787_s26 }
  0x2e   : > { %s1789_s21 = scalar_lea.vmem %s1788_s26, 256  ;;  %p1790_p4 = scmp.lt.s32.totalorder %s2041_s13, %s1788_s26 }
  0x2f   : > { %p1785_p1 = pnand %p1783_p0, %p1771_p3  ;;  %p1791_p12 = scmp.lt.s32.totalorder %s1789_s21, %s1782_s20 }
  0x31   : > { %p1786_p2 = pneg %p1785_p1  ;;  %p1792_p11 = por %p1791_p12, %p1790_p4 }
  0x33   : > { %p1793_p6 = pnand %p1792_p11, %p1786_p2 }
  0x35   : > { %1796 = shalt.err (!%p1793_p6)
}
  0x36   : > { %1648 = dma.hbm_to_vmem [thread:$0]  (!%p2037_p13), %s2033_s15, 128, %s2041_s13, %s469_s23  }
  0x37   : > { %p2392_p9 = scmp.lt.s32.totalorder %s1865_s24, 3  ;;  %p2393_p7 = scmp.ge.s32.totalorder %s1865_s24, 1 }
  0x39   : > { %p504_p0 = pnand %p2393_p7, %p2392_p9 }
  0x3a   : > { %s2068_s19 = sand.u32 (!%p504_p0), 1, %s1857_s22   ;;  %p2394_p6 = scmp.ne.s32.totalorder (!%p504_p0), %s2384_s17, 0 }
  0x3b   : > { %507 = sbr.rel (%p504_p0) target bundleno = 2603 (0xa2b), region = 84  ;;  %s1518_s27 = sshll.u32 (!%p504_p0), %s2068_s19, 3 }
  0x3c   : > { %s510_s30 = scalar_lea.sflag (!%p504_p0), [#allocation8], %s2068_s19  ;;  %s513_s18 = scalar_lea.vmem (!%p504_p0), [#allocation7], %s1518_s27 }
  0x40   : > { %1844 = dma.done.wait (%p2394_p6), %s510_s30, 128  }
  0x41   : > { %1846 = vsyncadd (%p2394_p6), %s510_s30, 4294967168  ;;  %vm606_vm0 = vcmask 523264   ;;  %v2078_v0 = vld [vmem:[%s513_s18] sm:$0xff]  ;;  %v1709_v7 = vld [vmem:[%s2353_s6 + $0x34] ss:$8 sps:$4 sm:$0xff]   ;;  %v1872_v10 = vmov 0   ;;  %v587_v28 = vlaneseq }
  0x42   : > { %v607_v1 = vsel %vm606_vm0, %v2078_v0, 0.0  ;;  %v1711_v8 = vld [vmem:[%s2353_s6 + $0x30] ss:$8 sps:$4 sm:$0xff]   ;;  %v1712_v9 = vld [vmem:[%s2353_s6 + $0x24] ss:$8 sps:$4 sm:$0xff]   ;;  %731 = vmatprep.mubr.bf16.mxu0 %v1872_v10  ;;  %1707 = vset.pattern.permute.xlu1 %v1872_v10  ;;  %p572_p11 = scmp.lt.s32.totalorder %s1991_s25, 1 }
  0x43   : > { %608 = vadd.xlane.f32.xlu0 %v607_v1  ;;  %707 = vmatprep.subr.bf16.mxu0 %v1709_v7  ;;  %v1714_v11 = vld [vmem:[%s2353_s6 + $0x20] ss:$8 sps:$4 sm:$0xff]   ;;  %v1715_v12 = vld [vmem:[%s2353_s6 + $0x14] ss:$8 sps:$4 sm:$0xff]   ;;  %v1717_v13 = vld [vmem:[%s2353_s6 + $0x10] ss:$8 sps:$4 sm:$0xff]  }
  0x44   : > { %1708 = vset.pattern.permute.xlu0 %v1872_v10  ;;  %708 = vmatpush1.bf16.msra.mxu0 %v1711_v8  ;;  %v1718_v14 = vld [vmem:[%s2353_s6 + $0x4] ss:$8 sps:$4 sm:$0xff]   ;;  %v1720_v15 = vld [vmem:[%s2353_s6] ss:$8 sps:$4 sm:$0xff]   ;;  %s573_s0 = scalar_select %p572_p11, %s1991_s25, 1  ;;  %v588_v29 = vand.u32 127, %v587_v28 }
  0x45   : > { %709 = vmatprep.subr.bf16.mxu0 %v1712_v9  ;;  %v1522_v22 = vld [vmem:[%s2351_s4] ss:$0 sm:$0xff]  ;;  %v2135_v34 = vshrl.u32 %v587_v28, 7  ;;  %vm742_vm4 = vcmask 125952   ;;  %s1874_s30 = smov 112   ;;  %s1876_s13 = smov 16  }
  0x46   : > { %s574_s29 = scalar_lea.vmem %s2348_s1, %s573_s0  ;;  %s1520_s26 = sshll.u32 %s573_s0, 3  ;;  %v1523_v24 = vld [vmem:[%s2352_s5] ss:$0 sm:$0xff]  ;;  %vm589_vm1 = vcmp.eq.s32.totalorder %v588_v29, 0 }
  0x47   : > { %s581_s18 = scalar_lea.vmem %s2350_s3, %s1520_s26  ;;  %v2119_v16 = vld [vmem:[%s574_s29] ss:$0 sm:$0xff]  ;;  %s577_s29 = scalar_lea.vmem %s2349_s2, %s573_s0  ;;  %v648_v35 = vsub.s32 0, %v2135_v34  ;;  %v652_v37 = vsub.s32 1, %v2135_v34 }
  0x48   : > { %710 = vmatpush1.bf16.msra.mxu0 %v1714_v11  ;;  %v586_v17 = vld [vmem:[%s581_s18] sm:$0xff]  ;;  %s1873_s0 = smov 64   ;;  %s1875_s18 = smov 48  }
  0x49   : > { %711 = vmatprep.subr.bf16.mxu0 %v1715_v12  ;;  %592 = vperm.xlu1 %1707, %v586_v17   ;;  %v1521_v31 = vld [vmem:[%s577_s29] ss:$0 sm:$0xff]  ;;  %s1877_s15 = smov 32   ;;  %s1878_s23 = smov 96  }
  0x4a   : > { %v644_v36 = vld [vmem:[%s2354_s7] sm:$0x3]  ;;  %s1879_s17 = smov 80   ;;  %s2164_s28 = scalar_lea.vmem [#allocation10], %s1518_s27 }
  0x4b   : > { %v649_v38 = vrot.slane %v644_v36, %v648_v35  ;;  %v653_v39 = vrot.slane %v644_v36, %v652_v37  ;;  %s2166_s20 = smov 0  }
  0x4c   : > { %712 = vmatpush1.bf16.msra.mxu0 %v1717_v13 }
  0x4d   : > { %713 = vmatprep.subr.bf16.mxu0 %v1718_v14 }
  0x50   : > { %714 = vmatpush1.bf16.msra.mxu0 %v1720_v15 }
  0xc4   : > { %v593_v30 = vpop.permute.xlu1 %592 }
  0xc5   : > { %v601_v32 = vmul.f32 %v1521_v31, %v593_v30 }
  0xc7   : > { %vm602_vm2 = vcmp.gt.f32.partialorder %v601_v32, 0.5 }
  0xc8   : > { %vm2131_vm3 = vmor %vm602_vm2, %vm589_vm1 }
  0xcc   : > { %v609_v2 = vpop.xlane.xlu0 %608 }
  0xcd   : > { %v611_v3 = vmul.f32 0.015625, %v609_v2 }
  0xcf   : > { %v612_v4 = vsub.f32 %v2078_v0, %v611_v3 }
  0xd1   : > { %v613_v5 = vmul.f32 %v612_v4, %v612_v4 }
  0xd3   : > { %v614_v6 = vsel %vm606_vm0, %v613_v5, 0.0 }
  0xd4   : > { %615 = vadd.xlane.f32.xlu0 %v614_v6 }
 0x15d   : > { %v616_v18 = vpop.xlane.xlu0 %615 }
 0x15e   : > { %v617_v19 = vmul.f32 0.015625, %v616_v18 }
 0x160   : > { %v618_v20 = vadd.f32 1e-06, %v617_v19 }
 0x162   : > { %1721 = vrsqrt.f32 %v618_v20 }
 0x16f   : > { %v1722_v21 = vpop.eup %1721 }
 0x170   : > { %v620_v23 = vmul.f32 %v1722_v21, %v612_v4 }
 0x172   : > { %v627_v25 = vmul.f32 %v1522_v22, %v620_v23 }
 0x174   : > { %v634_v26 = vadd.f32 %v1523_v24, %v627_v25 }
 0x176   : > { %v635_v27 = vpack.c.bf16 %v634_v26, %v634_v26 }
 0x178   : > { %1532 = vmatmul.mubr.msk.bf16.vlgmr.msra.gmra.mxu0 %vm606_vm0, %v635_v27 }
 0x238   : > { %v733_v40 = vpop.f32.mrf.mxu0 }
 0x239   : > { %v734_v41 = vadd.f32 %v733_v40, %v649_v38 }
 0x23a   : > { %v735_v42 = vpop.f32.mrf.mxu0 }
 0x23b   : > { %v740_v43 = vmul.f32 0.25, %v734_v41  ;;  %v1583_v44 = vpack.c.bf16 %v734_v41, %v734_v41  ;;  %v736_v45 = vadd.f32 %v735_v42, %v653_v39 }
 0x23c   : > { %v737_v46 = vpop.f32.mrf.mxu0 }
 0x23d   : > { %v741_v47 = vpack.c.bf16 %v740_v43, %v740_v43  ;;  %v752_v48 = vpack.c.bf16 %v736_v45, %v736_v45  ;;  %748 = vrot.lane.b32.xlu1 %v1583_v44, %s1873_s0 }
 0x23e   : > { %v738_v49 = vpop.f32.mrf.mxu0 }
 0x23f   : > { %743 = vst.msk [vmem:[#allocation2] sm:$0xf] %vm742_vm4, %v741_v47  ;;  %753 = vst.msk [vmem:[#allocation4] sm:$0xf] %vm742_vm4, %v752_v48  ;;  %757 = vrot.lane.b32.xlu0 %v741_v47, %s1874_s30 }
 0x241   : > { %762 = vrot.lane.b32.xlu1 %v1583_v44, %s1875_s18 }
 0x243   : > { %795 = vrot.lane.b32.xlu0 %v1583_v44, %s1876_s13 }
 0x245   : > { %780 = vrot.lane.b32.xlu1 %v1583_v44, %s1877_s15 }
 0x249   : > { %770 = vrot.lane.b32.xlu1 %v752_v48, %s1874_s30 }
 0x24d   : > { %775 = vrot.lane.b32.xlu1 %v741_v47, %s1878_s23 }
 0x251   : > { %785 = vrot.lane.b32.xlu1 %v752_v48, %s1878_s23 }
 0x255   : > { %790 = vrot.lane.b32.xlu1 %v741_v47, %s1879_s17 }
 0x259   : > { %800 = vrot.lane.b32.xlu1 %v752_v48, %s1879_s17 }
 0x2af   : > { %v749_v50 = vpop.permute.xlu1 %748 }
 0x2b0   : > { %751 = vst.msk [vmem:[#allocation3] sm:$0xf] %vm742_vm4, %v749_v50 }
 0x2b1   : > { %v758_v51 = vpop.permute.xlu0 %757 }
 0x2b2   : > { %761 = vst.msk [vmem:[#allocation2 + $0x4] sm:$0xf] %vm742_vm4, %v758_v51 }
 0x2b3   : > { %v763_v52 = vpop.permute.xlu1 %762 }
 0x2b4   : > { %766 = vst.msk [vmem:[#allocation3 + $0x4] sm:$0xf] %vm742_vm4, %v763_v52 }
 0x2b5   : > { %v796_v53 = vpop.permute.xlu0 %795 }
 0x2b6   : > { %799 = vst.msk [vmem:[#allocation3 + $0xc] sm:$0xf] %vm742_vm4, %v796_v53 }
 0x2b7   : > { %v781_v54 = vpop.permute.xlu1 %780 }
 0x2b8   : > { %784 = vst.msk [vmem:[#allocation3 + $0x8] sm:$0xf] %vm742_vm4, %v781_v54 }
 0x2bb   : > { %v771_v55 = vpop.permute.xlu1 %770 }
 0x2bc   : > { %774 = vst.msk [vmem:[#allocation4 + $0x4] sm:$0xf] %vm742_vm4, %v771_v55 }
 0x2bf   : > { %v776_v56 = vpop.permute.xlu1 %775 }
 0x2c0   : > { %779 = vst.msk [vmem:[#allocation2 + $0x8] sm:$0xf] %vm742_vm4, %v776_v56 }
 0x2c3   : > { %v786_v57 = vpop.permute.xlu1 %785 }
 0x2c4   : > { %789 = vst.msk [vmem:[#allocation4 + $0x8] sm:$0xf] %vm742_vm4, %v786_v57 }
 0x2c7   : > { %v791_v58 = vpop.permute.xlu1 %790 }
 0x2c8   : > { %794 = vst.msk [vmem:[#allocation2 + $0xc] sm:$0xf] %vm742_vm4, %v791_v58 }
 0x2cb   : > { %v801_v59 = vpop.permute.xlu1 %800 }
 0x2cc   : > { %804 = vst.msk [vmem:[#allocation4 + $0xc] sm:$0xf] %vm742_vm4, %v801_v59 }
 0x2cd LB: >> { %v1880_v60 = vmov 0.0   ;;  %vm1881_vm5 = vmmov 0   ;;  %s2172_s29 = sshll.u32 %s1869_s20, 2  ;;  %vm820_vm6 = vcmask 130048   ;;  %vm868_vm7 = vcmask 64512   ;;  %s810_s20 = sadd.s32 1, %s1869_s20   ;;  %s1869_s20 = sphi %s2166_s20, %s810_s20  }
 0x2ce   : >> { %1617 = vmatprep.subr.bf16.mxu0 %v1880_v60  ;;  %1619 = vmatprep.mubr.msk.bf16.mxu0 %vm1881_vm5, %v1880_v60  ;;  %s815_s27 = scalar_lea.vmem [#allocation3], %s2172_s29  ;;  %s812_s26 = scalar_lea.vmem [#allocation2], %s2172_s29  ;;  %vm882_vm8 = vcmask 1043456  }
 0x2cf   : >> { %1623 = vmatprep.subr.bf16.mxu1 %v1880_v60  ;;  %1625 = vmatprep.mubr.msk.bf16.mxu1 %vm1881_vm5, %v1880_v60  ;;  %v816_v61 = vld [vmem:[%s815_s27] sm:$0xf]  ;;  %s818_s21 = scalar_lea.vmem [#allocation4], %s2172_s29  ;;  %s930_s30 = scalar_lea.vmem [#allocation5], %s2172_s29 }
 0x2d0   : >> { %v825_v62 = vsel %vm820_vm6, %v816_v61, 0  ;;  %v813_v63 = vld [vmem:[%s812_s26] sm:$0xf]  ;;  %p807_p12 = scmp.ge.s32.totalorder %s810_s20, 4  }
 0x2d1   : >> { %1618 = vmatpush3.bf16.xpose.msra.mxu0 %v825_v62  ;;  %v1882_v28 = vmov (%p807_p12), 0.0   ;;  %v1727_v29 = vld [vmem:[%s2355_s8 + $0x18] sm:$0xff] (%p807_p12)   ;;  %v1728_v31 = vld [vmem:[%s2355_s8 + $0x10] sm:$0xff] (%p807_p12)   ;;  %v1729_v32 = vld [vmem:[%s2355_s8 + $0x8] sm:$0xff] (%p807_p12)   ;;  %vm1883_vm9 = vmmov (%p807_p12), 0   ;;  %vm940_vm10 = vcmask (%p807_p12), 257152  }
 0x2d2   : > { %v1730_v33 = vld [vmem:[%s2355_s8] sm:$0xff] (%p807_p12)   ;;  %vm948_vm11 = vcmask (%p807_p12), 388352   ;;  %vm956_vm12 = vcmask (%p807_p12), 519552   ;;  %v1731_v54 = vld [vmem:[%s2359_s12 + $0x30] ss:$8 sps:$4 sm:$0xff] (%p807_p12)   ;;  %s2398_s17 = sld [smem:[#allocation21_spill]] (%p807_p12) }
 0x2d3   : >> { %v819_v7 = vld [vmem:[%s818_s21] sm:$0xf]  ;;  %v1736_v55 = vld [vmem:[%s2359_s12 + $0x24] ss:$8 sps:$4 sm:$0xff] (%p807_p12)   ;;  %v1739_v57 = vld [vmem:[%s2359_s12 + $0x14] ss:$8 sps:$4 sm:$0xff] (%p807_p12)  }
 0x2d4   : >> { %v884_v8 = vsel %vm882_vm8, %v819_v7, 0  ;;  %v1542_v41 = vld [vmem:[%s2356_s9] ss:$0 sm:$0xff] (%p807_p12)  ;;  %v1737_v58 = vld [vmem:[%s2359_s12 + $0x10] ss:$8 sps:$4 sm:$0xff] (%p807_p12)   ;;  %s2397_s21 = sld [smem:[#allocation20_spill]] (%p807_p12) }
 0x2d5   : >> { %1624 = vmatpush3.bf16.msra.mxu1 %v884_v8  ;;  %v1734_v56 = vld [vmem:[%s2359_s12 + $0x20] ss:$8 sps:$4 sm:$0xff] (%p807_p12)   ;;  %v1742_v59 = vld [vmem:[%s2359_s12 + $0x4] ss:$8 sps:$4 sm:$0xff] (%p807_p12)   ;;  %v1743_v8 = vld [vmem:[%s2361_s14 + $0x78] sm:$0xff] (%p807_p12)   ;;  %s2399_s29 = sld [smem:[#allocation17_spill]] (%p807_p12) }
 0x2d6   : > { %1629 = vmatprep.subr.bf16.mxu1 (%p807_p12), %v1882_v28  ;;  %v1740_v60 = vld [vmem:[%s2359_s12] ss:$8 sps:$4 sm:$0xff] (%p807_p12)   ;;  %1595 = vmatprep.subr.bf16.mxu0 (%p807_p12), %v1743_v8  ;;  %s1580_s20 = sshll.u32 (%p807_p12), %s1991_s25, 7  ;;  %s2400_s26 = sld [smem:[#allocation22_spill]] (%p807_p12) }
 0x2d7   : > { %s1884_s23 = smov (%p807_p12), [#allocation10]  }
 0x2d8   : >> { %1620 = vmatmul.mubr.msk.bf16.vlgmr.msra.gmra.mxu0 %vm820_vm6, %v813_v63 }
 0x2db   : > { %p2401_p1 = scmp.ne.s32.totalorder (%p807_p12), %s2399_s29, 0 }
 0x398   : >> { %v861_v1 = vpop.f32.mrf.mxu0 }
 0x399   : >> { %v867_v2 = vsel %vm2131_vm3, %v861_v1, -1e+09 }
 0x39a   : >> { %v1621_v3 = vpop.f32.mrf.mxu0  ;;  %v869_v4 = vsel %vm868_vm7, %v867_v2, -inf }
 0x39b   : >> { %870 = vmax.xlane.f32.xlu0 %v869_v4  ;;  %v1550_v4 = vld [vmem:[%s2358_s11] ss:$0 sm:$0xff] (%p807_p12) }
 0x39c   : >> { %v864_v5 = vpop.f32.mrf.mxu0 }
 0x39e   : >> { %v1622_v6 = vpop.f32.mrf.mxu0 }
 0x424   : >> { %v871_v9 = vpop.xlane.xlu0 %870 }
 0x425   : >> { %v872_v11 = vsub.f32 %v867_v2, %v871_v9  ;;  %v1549_v2 = vld [vmem:[%s2357_s10] ss:$0 sm:$0xff] (%p807_p12)  ;;  %v1744_v9 = vld [vmem:[%s2361_s14 + $0x38] sm:$0xff] (%p807_p12)  }
 0x426   : > { %1596 = vmatpush3.bf16.msra.mxu0 (%p807_p12), %v1744_v9 }
 0x427   : >> { %v873_v12 = vmul.f32 1.442695, %v872_v11  ;;  %v1745_v11 = vld [vmem:[%s2361_s14 + $0x70] sm:$0xff] (%p807_p12)  }
 0x428   : > { %1597 = vmatprep.subr.bf16.mxu0 (%p807_p12), %v1745_v11 }
 0x429   : >> { %1723 = vpow2.f32 %v873_v12  ;;  %v1746_v12 = vld [vmem:[%s2361_s14 + $0x30] sm:$0xff] (%p807_p12)  }
 0x42a   : > { %1598 = vmatpush3.bf16.msra.mxu0 (%p807_p12), %v1746_v12 }
 0x436   : >> { %v1724_v13 = vpop.eup %1723 }
 0x437   : >> { %v875_v14 = vsel %vm868_vm7, %v1724_v13, 0.0  ;;  %v878_v15 = vpack.c.bf16 %v1724_v13, %v1724_v13  ;;  %v1747_v13 = vld [vmem:[%s2361_s14 + $0x68] sm:$0xff] (%p807_p12)  }
 0x438   : >> { %876 = vadd.xlane.f32.xlu0 %v875_v14  ;;  %v1748_v14 = vld [vmem:[%s2361_s14 + $0x28] sm:$0xff] (%p807_p12)   ;;  %1599 = vmatprep.subr.bf16.mxu0 (%p807_p12), %v1747_v13 }
 0x439   : >> { %1626 = vmatmul.mubr.msk.bf16.vlgmr.msra.gmra.mxu1 %vm868_vm7, %v878_v15  ;;  %1600 = vmatpush3.bf16.msra.mxu0 (%p807_p12), %v1748_v14  ;;  %v1749_v15 = vld [vmem:[%s2361_s14 + $0x60] sm:$0xff] (%p807_p12)  }
 0x43a   : > { %1630 = vmatpush3.bf16.msra.mxu1 (%p807_p12), %v1727_v29  ;;  %1637 = vmatprep.mubr.msk.bf16.mxu1 (%p807_p12), %vm1883_vm9, %v1882_v28 }
 0x43b   : > { %1631 = vmatprep.subr.bf16.mxu1 (%p807_p12), %v1882_v28  ;;  %1601 = vmatprep.subr.bf16.mxu0 (%p807_p12), %v1749_v15 }
 0x43e   : > { %1632 = vmatpush3.bf16.msra.mxu1 (%p807_p12), %v1728_v31 }
 0x43f   : > { %1633 = vmatprep.subr.bf16.mxu1 (%p807_p12), %v1882_v28 }
 0x442   : > { %1634 = vmatpush3.bf16.msra.mxu1 (%p807_p12), %v1729_v32 }
 0x443   : > { %1635 = vmatprep.subr.bf16.mxu1 (%p807_p12), %v1882_v28 }
 0x446   : > { %1636 = vmatpush3.bf16.msra.mxu1 (%p807_p12), %v1730_v33 }
 0x4c1   : >> { %v877_v17 = vpop.xlane.xlu0 %876 }
 0x4c2   : >> { %1725 = vrcp.f32 %v877_v17  ;;  %v1750_v17 = vld [vmem:[%s2361_s14 + $0x20] sm:$0xff] (%p807_p12)  }
 0x4c3   : > { %1602 = vmatpush3.bf16.msra.mxu0 (%p807_p12), %v1750_v17 }
 0x4cf   : >> { %v1726_v18 = vpop.eup %1725 }
 0x4f9   : >> { %v920_v19 = vpop.f32.mrf.mxu1 }
 0x4fa   : >> { %v927_v20 = vmul.f32 %v1726_v18, %v920_v19  ;;  %v1751_v18 = vld [vmem:[%s2361_s14 + $0x58] sm:$0xff] (%p807_p12)  }
 0x4fb   : >> { %v1627_v21 = vpop.f32.mrf.mxu1  ;;  %809 = sbr.rel (!%p807_p12) target bundleno = 717 (0x2cd), region = 161  ;;  %v1752_v19 = vld [vmem:[%s2361_s14 + $0x18] sm:$0xff] (%p807_p12)   ;;  %1603 = vmatprep.subr.bf16.mxu0 (%p807_p12), %v1751_v18 }
 0x4fc   : >> { %v928_v22 = vpack.c.bf16 %v927_v20, %v927_v20  ;;  %1604 = vmatpush3.bf16.msra.mxu0 (%p807_p12), %v1752_v19  ;;  %v1753_v20 = vld [vmem:[%s2361_s14 + $0x50] sm:$0xff] (%p807_p12)  }
 0x4fd   : >> { %v923_v23 = vpop.f32.mrf.mxu1  ;;  %v1754_v21 = vld [vmem:[%s2361_s14 + $0x10] sm:$0xff] (%p807_p12)   ;;  %1605 = vmatprep.subr.bf16.mxu0 (%p807_p12), %v1753_v20 }
 0x4fe   : >> { %931 = vst.msk [vmem:[%s930_s30] sm:$0xf] %vm742_vm4, %v928_v22  ;;  %v1755_v22 = vld [vmem:[%s2361_s14 + $0x48] sm:$0xff] (%p807_p12)  }
 0x4ff   : >> { %v1628_v24 = vpop.f32.mrf.mxu1  ;;  %v1756_v23 = vld [vmem:[%s2361_s14 + $0x8] sm:$0xff] (%p807_p12)  }
 0x500   : > { %1606 = vmatpush3.bf16.msra.mxu0 %v1754_v21  ;;  %v1757_v24 = vld [vmem:[%s2361_s14 + $0x40] sm:$0xff]  }
 0x501   : > { %1607 = vmatprep.subr.bf16.mxu0 %v1755_v22 }
 0x504   : > { %1608 = vmatpush3.bf16.msra.mxu0 %v1756_v23 }
 0x505   : > { %v935_v25 = vld [vmem:[#allocation5 + $0x4] sm:$0xf]  ;;  %v943_v26 = vld [vmem:[#allocation5 + $0x8] sm:$0xf]  ;;  %v951_v27 = vld [vmem:[#allocation5 + $0xc] sm:$0xf]  ;;  %1609 = vmatprep.subr.bf16.mxu0 %v1757_v24 }
 0x506   : > { %937 = vrot.lane.b32.xlu0 %v935_v25, %s1876_s13  ;;  %953 = vrot.lane.b32.xlu1 %v951_v27, %s1875_s18  ;;  %v932_v30 = vld [vmem:[#allocation5] sm:$0xf]  ;;  %v1758_v25 = vld [vmem:[%s2361_s14] sm:$0xff]   ;;  %s1399_s13 = sshll.u32 %s2164_s28, 4  ;;  %s1400_s13 = int_to_ptr.vmem [resolvable:$true] %s1399_s13 }
 0x507   : > { %933 = vst.msk [vmem:[#allocation6] sm:$0xf] %vm742_vm4, %v932_v30  ;;  %s1797_s30 = scalar_lea.vmem %s1400_s13, 128 }
 0x508   : > { %1610 = vmatpush3.bf16.msra.mxu0 %v1758_v25  ;;  %p1798_p13 = scmp.ne.s32.totalorder %s1400_s13, %s1797_s30 }
 0x50a   : > { %945 = vrot.lane.b32.xlu0 %v943_v26, %s1877_s15  ;;  %v1087_v26 = vld [vmem:[%s2397_s21] sm:$0x3]  ;;  %s1397_s15 = scalar_lea.hbm %s2400_s26, %s1580_s20  ;;  %s1386_s21 = scalar_lea.sflag [#allocation9], %s2068_s19 }
 0x50b   : > { %v1092_v27 = vrot.slane %v1087_v26, %v648_v35  ;;  %v1096_v28 = vrot.slane %v1087_v26, %v652_v37  ;;  %p1799_p3 = pnand %p1798_p13, %p2401_p1 }
 0x50d   : > { %p1800_p5 = pneg %p1799_p3 }
 0x578   : > { %v938_v36 = vpop.permute.xlu0 %937  ;;  %v954_v38 = vpop.permute.xlu1 %953 }
 0x579   : > { %941 = vst.msk [vmem:[#allocation6] sm:$0xf] %vm940_vm10, %v938_v36 }
 0x57c   : > { %v946_v39 = vpop.permute.xlu0 %945 }
 0x57d   : > { %949 = vst.msk [vmem:[#allocation6] sm:$0xf] %vm948_vm11, %v946_v39 }
 0x57e   : > { %957 = vst.msk [vmem:[#allocation6] sm:$0xf] %vm956_vm12, %v954_v38 }
 0x585   : > { %v958_v40 = vld [vmem:[#allocation6] sm:$0xf] }
 0x586   : > { %1638 = vmatmul.mubr.msk.bf16.vlgmr.msra.gmra.mxu1 %vm606_vm0, %v958_v40 }
 0x587   : > { %1174 = vmatprep.mubr.bf16.mxu1 %v1872_v10 }
 0x646   : > { %v1035_v42 = vpop.f32.mrf.mxu1 }
 0x647   : > { %v1036_v43 = vadd.f32 %v1542_v41, %v1035_v42 }
 0x648   : > { %v1639_v44 = vpop.f32.mrf.mxu1 }
 0x649   : > { %v1047_v45 = vmul.f32 %v2119_v16, %v1036_v43 }
 0x64a   : > { %v1038_v46 = vpop.f32.mrf.mxu1 }
 0x64b   : > { %v2210_v47 = vadd.f32 %v1047_v45, %v2078_v0  ;;  %v1733_v0 = vld [vmem:[%s2359_s12 + $0x34] ss:$8 sps:$4 sm:$0xff]  }
 0x64c   : > { %v1640_v48 = vpop.f32.mrf.mxu1  ;;  %1150 = vmatprep.subr.bf16.mxu1 %v1733_v0 }
 0x64d   : > { %v1051_v49 = vsel %vm606_vm0, %v2210_v47, 0.0  ;;  %1151 = vmatpush1.bf16.msra.mxu1 %v1731_v54 }
 0x64e   : > { %1052 = vadd.xlane.f32.xlu1 %v1051_v49  ;;  %1152 = vmatprep.subr.bf16.mxu1 %v1736_v55 }
 0x651   : > { %1153 = vmatpush1.bf16.msra.mxu1 %v1734_v56 }
 0x652   : > { %1154 = vmatprep.subr.bf16.mxu1 %v1739_v57 }
 0x655   : > { %1155 = vmatpush1.bf16.msra.mxu1 %v1737_v58 }
 0x656   : > { %1156 = vmatprep.subr.bf16.mxu1 %v1742_v59 }
 0x659   : > { %1157 = vmatpush1.bf16.msra.mxu1 %v1740_v60 }
 0x6d7   : > { %v1053_v50 = vpop.xlane.xlu1 %1052 }
 0x6d8   : > { %v1054_v10 = vmul.f32 0.015625, %v1053_v50  ;;  %v1562_v50 = vld [vmem:[%s2398_s17] ss:$0 sm:$0xff] }
 0x6da   : > { %v1055_v51 = vsub.f32 %v2210_v47, %v1054_v10 }
 0x6dc   : > { %v1056_v52 = vmul.f32 %v1055_v51, %v1055_v51 }
 0x6de   : > { %v1057_v53 = vsel %vm606_vm0, %v1056_v52, 0.0 }
 0x6df   : > { %1058 = vadd.xlane.f32.xlu0 %v1057_v53 }
 0x768   : > { %v1059_v61 = vpop.xlane.xlu0 %1058 }
 0x769   : > { %v1060_v62 = vmul.f32 0.015625, %v1059_v61 }
 0x76b   : > { %v1061_v63 = vadd.f32 1e-06, %v1060_v62 }
 0x76d   : > { %1759 = vrsqrt.f32 %v1061_v63 }
 0x77a   : > { %v1760_v1 = vpop.eup %1759 }
 0x77b   : > { %v1063_v3 = vmul.f32 %v1760_v1, %v1055_v51 }
 0x77d   : > { %v1070_v5 = vmul.f32 %v1549_v2, %v1063_v3 }
 0x77f   : > { %v1077_v6 = vadd.f32 %v1550_v4, %v1070_v5 }
 0x781   : > { %v1078_v7 = vpack.c.bf16 %v1077_v6, %v1077_v6 }
 0x783   : > { %1559 = vmatmul.mubr.msk.bf16.vlgmr.msra.gmra.mxu1 %vm606_vm0, %v1078_v7 }
 0x843   : > { %v1176_v29 = vpop.f32.mrf.mxu1 }
 0x844   : > { %v1177_v30 = vadd.f32 %v1176_v29, %v1092_v27 }
 0x845   : > { %v1178_v31 = vpop.f32.mrf.mxu1 }
 0x846   : > { %v1560_v32 = vmul.f32 -1.442695, %v1177_v30  ;;  %v1179_v33 = vadd.f32 %v1178_v31, %v1096_v28 }
 0x847   : > { %v1180_v36 = vpop.f32.mrf.mxu1 }
 0x848   : > { %1761 = vpow2.f32 %v1560_v32  ;;  %v1561_v38 = vmul.f32 -1.442695, %v1179_v33 }
 0x849   : > { %v1181_v39 = vpop.f32.mrf.mxu1 }
 0x84a   : > { %1763 = vpow2.f32 %v1561_v38 }
 0x855   : > { %v1762_v40 = vpop.eup %1761 }
 0x856   : > { %v1189_v41 = vadd.f32 1.0, %v1762_v40 }
 0x857   : > { %v1764_v42 = vpop.eup %1763 }
 0x858   : > { %1765 = vrcp.f32 %v1189_v41  ;;  %v1190_v43 = vadd.f32 1.0, %v1764_v42 }
 0x85a   : > { %1767 = vrcp.f32 %v1190_v43 }
 0x865   : > { %v1766_v35 = vpop.eup %1765 }
 0x866   : > { %v1195_v34 = vmul.f32 %v1766_v35, %v1177_v30 }
 0x867   : > { %v1768_v44 = vpop.eup %1767 }
 0x868   : > { %v1196_v37 = vmul.f32 %v1768_v44, %v1179_v33  ;;  %v1197_v46 = vpack.c.bf16 %v1195_v34, %v1195_v34 }
 0x86a   : > { %v1198_v45 = vpack.c.bf16 %v1196_v37, %v1196_v37 }
 0x86c   : > { %1366 = vmatprep.mubr.bf16.mxu0 %v1198_v45 }
 0x86d   : > { %1367 = vmatmul.mubr.bf16.vlgmr.msra.gmra.mxu0 %v1197_v46 }
 0x92d   : > { %v1611_v48 = vpop.f32.mrf.mxu0 }
 0x92f   : > { %v1612_v49 = vpop.f32.mrf.mxu0 }
 0x930   : > { %v1613_v10 = vadd.f32 %v1612_v49, %v1611_v48 }
 0x931   : > { %v1614_v51 = vpop.f32.mrf.mxu0 }
 0x932   : > { %v1369_v52 = vadd.f32 %v1613_v10, %v1562_v50 }
 0x933   : > { %v1615_v53 = vpop.f32.mrf.mxu0 }
 0x934   : > { %1375 = vrot.lane.b32.xlu0 %v1369_v52, %s1873_s0 }
 0x9a6   : > { %v1376_v54 = vpop.permute.xlu0 %1375 }
 0x9a7   : > { %v1378_v0 = vmul.f32 %v2119_v16, %v1376_v54 }
 0x9a9   : > { %1380 = vrot.lane.b32.xlu1 %v1378_v0, %s1873_s0  ;;  %s1801_s0 = sshll.u32 %s1884_s23, 4  ;;  %s1802_s0 = int_to_ptr.vmem [resolvable:$false] %s1801_s0 }
 0x9aa   : > { %s1803_s25 = scalar_lea.vmem %s1802_s0, 256  ;;  %p1804_p8 = scmp.lt.s32.totalorder %s1400_s13, %s1802_s0 }
 0x9ab   : > { %p1805_p10 = scmp.lt.s32.totalorder %s1803_s25, %s1797_s30 }
 0x9ad   : > { %p1806_p2 = por %p1805_p10, %p1804_p8 }
 0x9af   : > { %p1807_p4 = pnand %p1806_p2, %p1800_p5 }
 0xa1b   : > { %v1381_v55 = vpop.permute.xlu1 %1380 }
 0xa1c   : > { %v1383_v56 = vadd.f32 %v1381_v55, %v2210_v47 }
 0xa1e   : > { %1384 = vst.msk [vmem:[%s2164_s28] sm:$0xff] %vm606_vm0, %v1383_v56 }
 0xa1f   : > { %1810 = shalt.err (!%p1807_p4)
}
 0xa20   : > { %s1811_s17 = scalar_lea.hbm %s1397_s15, 128  ;;  %s1815_s20 = scalar_lea.hbm %s2400_s26, 256 }
 0xa21   : > { %p1812_p9 = scmp.ne.s32.totalorder %s1397_s15, %s1811_s17  ;;  %p1816_p6 = scmp.lt.s32.totalorder %s1397_s15, %s2400_s26 }
 0xa22   : > { %p1817_p11 = scmp.lt.s32.totalorder %s1815_s20, %s1811_s17 }
 0xa23   : > { %p1813_p7 = pnand %p1812_p9, %p2401_p1 }
 0xa24   : > { %p1818_p12 = por %p1817_p11, %p1816_p6 }
 0xa25   : > { %p1814_p0 = pneg %p1813_p7 }
 0xa27   : > { %p1819_p13 = pnand %p1818_p12, %p1814_p0 }
 0xa29   : > { %1822 = shalt.err (!%p1819_p13)
}
 0xa2a   : > { %1643 = dma.vmem_to_hbm [thread:$0]  (%p2401_p1), %s1400_s13, 128, %s1397_s15, %s1386_s21  }
 0xa2b PF: > { %s2402_s30 = sld [smem:[#allocation13_spill]]  ;;  %p2405_p5 = scmp.ge.s32.totalorder %s1865_s24, 2 }
 0xa2c   : > { %s2403_s23 = sld [smem:[#allocation18_spill]] }
 0xa31   : > { %s1411_s0 = sand.u32 1, %s2402_s30  }
 0xa32   : > { %p2404_p3 = scmp.ne.s32.totalorder %s2403_s23, 0  ;;  %s1412_s25 = scalar_lea.sflag [#allocation9], %s1411_s0 }
 0xa34   : > { %p1650_p8 = pnand %p2405_p5, %p2404_p3 }
 0xa36   : > { %p1651_p10 = pneg %p1650_p8 }
 0xa38   : > { %1848 = dma.done.wait (%p1651_p10), %s1412_s25, 128  }
 0xa39   : > { %1850 = vsyncadd (%p1651_p10), %s1412_s25, 4294967168  ;;  %s2406_s24 = sld [smem:[#allocation15_spill]]  ;;  %s2409_s21 = smov %s1857_s22 }
 0xa3a   : > { %s2407_s17 = sld [smem:[#allocation14_spill]] }
 0xa3b   : > { %s2408_s23 = sld [smem:[#allocation16_spill]] }
 0xa3f   : > { %p29_p2 = scmp.ge.s32.totalorder %s2406_s24, 4  }
 0xa40   : > { %s2410_s22 = smov %s2407_s17 }
 0xa41   :  { %31 = sbr.rel (!%p29_p2) target bundleno = 10 (0xa), region = 172 }
 0xa46   :  { %1417 = vsyncpa [#allocation8], 1 }
 0xa47   :  { %1419 = vsyncpa [#allocation8 + $0x1], 1 }
 0xa48   :  { %1420 = vsyncpa [#allocation9], 1 }
 0xa49   :  { %1422 = vsyncpa [#allocation9 + $0x1], 1 }

</bundles_post_ra>
